<compile_context>
chip_gen: v6e
topology: v6e:2x2x1
jax: 0.10.0
libtpu: 0.0.40
codegen_flags: <defaults>
</compile_context>

<pallas_src>
import functools
import math

import jax
import jax.numpy as jnp
import numpy as np
from jax import lax
from jax.experimental import pallas as pl
from jax.experimental.pallas import tpu as pltpu


_GELU_C = math.sqrt(2.0 / math.pi)
_MASK_VALUE = -1e10


def _gelu(x):
    # x*x*x (VALU) instead of jnp.power(x, 3); tanh rides the EUP slot.
    return 0.5 * x * (1.0 + jnp.tanh(_GELU_C * (x + 0.044715 * (x * x * x))))


def _layer_norm(v, w, b, eps):
    u = jnp.mean(v, axis=-1, keepdims=True)
    s = jnp.mean((v - u) ** 2, axis=-1, keepdims=True)
    # rsqrt rides the EUP slot instead of VALU sqrt + divide.
    return w * ((v - u) * lax.rsqrt(s + eps)) + b


def block_kernel(x_ref,
                 ln1w_ref, ln1b_ref,
                 wattn_ref, battn_ref, wproj_ref, bproj_ref,
                 ln2w_ref, ln2b_ref,
                 wfc_ref, bfc_ref, wfcp_ref, bfcp_ref,
                 out_ref, present_ref,
                 kv_ref, attn_ref,
                 *, n_head, scale, eps, q_tile, compute_dtype):
    qi = pl.program_id(1)
    C = x_ref.shape[2]
    hd = C // n_head
    cdt = compute_dtype

    # ---- LN1 + c_attn for THIS query tile only (incremental K/V) -----------
    xq = x_ref[0]                                                # (tq, C) f32
    h1 = _layer_norm(xq, ln1w_ref[...], ln1b_ref[...], eps).astype(cdt)
    qkv = jnp.dot(h1, wattn_ref[...],
                  preferred_element_type=jnp.float32) + battn_ref[...]

    # Append this tile's K/V rows to the resident scratch; emit `present` for
    # this tile (lane-dense (2, tq, C), same bf16 values attention will use).
    kv_tile = qkv[:, C:].astype(cdt)                             # (tq, 2C)
    row0 = pl.multiple_of(qi * q_tile, q_tile)
    kv_ref[pl.ds(row0, q_tile), :] = kv_tile
    present_ref[0, 0] = kv_tile[:, :C]                           # key
    present_ref[1, 0] = kv_tile[:, C:]                           # value

    q = qkv[:, :C]
    if scale:
        # fold 1/sqrt(hd) into Q (tq*C muls instead of H*tq*T divides).
        q = q * (1.0 / math.sqrt(hd))
    q = q.astype(cdt)                                            # (tq, C)

    # global query-row indices for the causal mask of this tile
    row_ids = qi * q_tile + lax.broadcasted_iota(jnp.int32, (q_tile, q_tile), 0)

    # ---- causal attention: only the first (qi+1) key tiles are visible -----
    for h in range(n_head):
        qh = q[:, h * hd:(h + 1) * hd]                           # (tq, hd)

        def kv_step(kt, carry):
            m_prev, l_prev, acc_prev = carry
            k0 = pl.multiple_of(kt * q_tile, q_tile)
            kvt = kv_ref[pl.ds(k0, q_tile), :]                   # (tk, 2C) bf16
            kh = kvt[:, h * hd:(h + 1) * hd]                     # (tk, hd)
            vh = kvt[:, C + h * hd:C + (h + 1) * hd]             # (tk, hd)
            s = lax.dot_general(qh, kh, (((1,), (1,)), ((), ())),
                                preferred_element_type=jnp.float32)  # (tq, tk)
            col_ids = kt * q_tile + lax.broadcasted_iota(
                jnp.int32, (q_tile, q_tile), 1)
            s = jnp.where(row_ids >= col_ids, s, _MASK_VALUE)
            m_new = jnp.maximum(m_prev, jnp.max(s, axis=-1, keepdims=True))
            alpha = jnp.exp(m_prev - m_new)
            p = jnp.exp(s - m_new)
            l_new = alpha * l_prev + jnp.sum(p, axis=-1, keepdims=True)
            acc_new = alpha * acc_prev + jnp.dot(
                p.astype(cdt), vh, preferred_element_type=jnp.float32)
            return m_new, l_new, acc_new

        init = (jnp.full((q_tile, 1), -1e30, jnp.float32),
                jnp.zeros((q_tile, 1), jnp.float32),
                jnp.zeros((q_tile, hd), jnp.float32))
        m_i, l_i, acc = lax.fori_loop(0, qi + 1, kv_step, init)
        # write this head's output into the merge scratch (static col slice)
        attn_ref[:, h * hd:(h + 1) * hd] = acc * pl.reciprocal(l_i, approx=True)

    # single K=C c_proj matmul (full MXU contraction depth) + residual 1
    a = jnp.dot(attn_ref[...].astype(cdt), wproj_ref[...],
                preferred_element_type=jnp.float32) + bproj_ref[...]
    x2 = xq + a                                                  # (tq, C) f32

    # ---- LN2 + MLP + residual 2 ---------------------------------------------
    h2 = _layer_norm(x2, ln2w_ref[...], ln2b_ref[...], eps).astype(cdt)
    ff = jnp.dot(h2, wfc_ref[...],
                 preferred_element_type=jnp.float32) + bfc_ref[...]
    ff = _gelu(ff).astype(cdt)
    mlp_out = jnp.dot(ff, wfcp_ref[...],
                      preferred_element_type=jnp.float32) + bfcp_ref[...]
    out_ref[0] = (x2 + mlp_out).astype(out_ref.dtype)


def _vmem_budget():
    """Generation-aware VMEM budget: ~96 MiB on v5e/v6e, ~48 MiB on v7x."""
    default_cap = 64 * 1024 * 1024
    try:
        cap = getattr(pltpu.get_tpu_info(), "vmem_capacity_bytes", None)
        if not cap:
            cap = default_cap
    except Exception:
        cap = default_cap
    return int(max(32 * 1024 * 1024, min(cap * 3 // 4, 100 * 1024 * 1024)))


def _pick_q_tile(T, C, vmem_budget):
    """Prefer big, MXU-friendly query tiles that fit the VMEM budget."""
    divisors = [c for c in (512, 256, 128) if T % c == 0]
    if not divisors:
        return T
    # resident: bf16 weights (x2 pipeline buffers) + (T, 2C) bf16 K/V scratch
    resident = 2 * (24 * C * C * 2) + T * 2 * C * 2
    for cand in divisors:
        tile_bytes = 48 * cand * C   # rough per-tile activation / buffer bytes
        if resident + tile_bytes <= vmem_budget:
            return cand
    return divisors[-1]


def block_forward(x, params, *, n_head, scale=True, eps=1e-5,
                  compute_dtype=jnp.bfloat16, q_tile=None):
    """x: (B, T, C) float32. Returns (out (B,T,C), present (2,B,H,T,hd))."""
    B, T, C = x.shape
    assert C % n_head == 0
    hd = C // n_head
    vmem_budget = _vmem_budget()
    if q_tile is None:
        q_tile = _pick_q_tile(T, C, vmem_budget)
    assert T % q_tile == 0
    n_q = T // q_tile

    kernel = functools.partial(block_kernel, n_head=n_head, scale=scale,
                               eps=eps, q_tile=q_tile,
                               compute_dtype=compute_dtype)

    cast = lambda w: w.astype(compute_dtype)   # bf16 MXU inputs, f32 accumulate

    def const(shape):
        return pl.BlockSpec(shape, lambda b, qi: (0,) * len(shape))

    in_specs = [
        pl.BlockSpec((1, q_tile, C), lambda b, qi: (b, qi, 0)),   # x (q tile)
        const((1, C)), const((1, C)),                             # ln_1 w, b
        const((C, 3 * C)), const((1, 3 * C)),                     # c_attn w, b
        const((C, C)), const((1, C)),                             # attn c_proj w, b
        const((1, C)), const((1, C)),                             # ln_2 w, b
        const((C, 4 * C)), const((1, 4 * C)),                     # mlp c_fc w, b
        const((4 * C, C)), const((1, C)),                         # mlp c_proj w, b
    ]
    out_specs = (
        pl.BlockSpec((1, q_tile, C), lambda b, qi: (b, qi, 0)),   # out x
        pl.BlockSpec((2, 1, q_tile, C), lambda b, qi: (0, b, qi, 0)),  # present
    )
    out_shape = (
        jax.ShapeDtypeStruct((B, T, C), jnp.float32),
        jax.ShapeDtypeStruct((2, B, T, C), compute_dtype),        # bf16 writeback
    )

    flops = int(B * (24 * T * C * C + 4 * T * T * C))
    transcendentals = int(B * (n_head * T * T + 4 * T * C))
    bytes_accessed = int(B * T * C * 4 * 2          # x in + out (f32)
                         + 2 * B * T * C * 2        # present (bf16)
                         + 24 * C * C * 2           # bf16 weights
                         + 14 * C * 4)              # biases / LN params

    out, present_dense = pl.pallas_call(
        kernel,
        grid=(B, n_q),
        in_specs=in_specs,
        out_specs=out_specs,
        out_shape=out_shape,
        scratch_shapes=[pltpu.VMEM((T, 2 * C), compute_dtype),    # resident K/V
                        pltpu.VMEM((q_tile, C), jnp.float32)],    # head-merge buf
        compiler_params=pltpu.CompilerParams(
            # qi must stay "arbitrary": later query tiles reuse the K/V rows
            # written by earlier tiles.  Batch axis shards across cores.
            dimension_semantics=("parallel", "arbitrary"),
            vmem_limit_bytes=vmem_budget),
        cost_estimate=pl.CostEstimate(flops=flops,
                                      transcendentals=transcendentals,
                                      bytes_accessed=bytes_accessed),
    )(x,
      params['ln1_w'], params['ln1_b'],
      cast(params['w_attn']), params['b_attn'],
      cast(params['w_attn_proj']), params['b_attn_proj'],
      params['ln2_w'], params['ln2_b'],
      cast(params['w_fc']), params['b_fc'],
      cast(params['w_fc_proj']), params['b_fc_proj'])

    # Lane-dense bf16 kernel stores; head split / transpose / f32 cast is a
    # cheap XLA copy in the wrapper.
    present = present_dense.reshape(2, B, T, n_head, hd).transpose(0, 1, 3, 2, 4)
    return out, present.astype(jnp.float32)


# --------------------- pure-JAX f32 reference (for checking) -----------------
def block_forward_ref(x, params, *, n_head, scale=True, eps=1e-5):
    B, T, C = x.shape
    hd = C // n_head

    def ln(v, w, b):
        u = jnp.mean(v, -1, keepdims=True)
        s = jnp.mean((v - u) ** 2, -1, keepdims=True)
        return w * ((v - u) / jnp.sqrt(s + eps)) + b

    h = ln(x, params['ln1_w'], params['ln1_b'])
    qkv = h @ params['w_attn'] + params['b_attn']
    q, k, v = jnp.split(qkv, 3, axis=-1)
    q = q.reshape(B, T, n_head, hd).transpose(0, 2, 1, 3)
    k = k.reshape(B, T, n_head, hd).transpose(0, 2, 3, 1)
    v = v.reshape(B, T, n_head, hd).transpose(0, 2, 1, 3)
    w = jnp.einsum('bhqd,bhdk->bhqk', q, k)
    if scale:
        w = w / math.sqrt(hd)
    mask = jnp.tril(jnp.ones((T, T)))[None, None]
    w = w * mask - 1e10 * (1 - mask)
    w = jax.nn.softmax(w, axis=-1)
    a = jnp.einsum('bhqk,bhkd->bhqd', w, v)
    a = a.transpose(0, 2, 1, 3).reshape(B, T, C)
    a = a @ params['w_attn_proj'] + params['b_attn_proj']
    x2 = x + a
    present = jnp.stack((k.transpose(0, 1, 3, 2), v))
    h2 = ln(x2, params['ln2_w'], params['ln2_b'])
    ff = _gelu(h2 @ params['w_fc'] + params['b_fc'])
    m = ff @ params['w_fc_proj'] + params['b_fc_proj']
    return x2 + m, present


def _make_params(key, C):
    ks = jax.random.split(key, 4)
    return {
        'ln1_w': jnp.ones((1, C), jnp.float32),
        'ln1_b': jnp.zeros((1, C), jnp.float32),
        'w_attn': 0.02 * jax.random.normal(ks[0], (C, 3 * C), jnp.float32),
        'b_attn': jnp.zeros((1, 3 * C), jnp.float32),
        'w_attn_proj': 0.02 * jax.random.normal(ks[1], (C, C), jnp.float32),
        'b_attn_proj': jnp.zeros((1, C), jnp.float32),
        'ln2_w': jnp.ones((1, C), jnp.float32),
        'ln2_b': jnp.zeros((1, C), jnp.float32),
        'w_fc': 0.02 * jax.random.normal(ks[2], (C, 4 * C), jnp.float32),
        'b_fc': jnp.zeros((1, 4 * C), jnp.float32),
        'w_fc_proj': 0.02 * jax.random.normal(ks[3], (4 * C, C), jnp.float32),
        'b_fc_proj': jnp.zeros((1, C), jnp.float32),
    }


def _run_case(key, B, T, C, H, q_tile=None, rtol=2e-2, atol=2e-2):
    kp, kx = jax.random.split(key)
    params = _make_params(kp, C)
    x = jax.random.normal(kx, (B, T, C), jnp.float32)

    out, present = block_forward(x, params, n_head=H, scale=True, eps=1e-5,
                                 q_tile=q_tile)
    out = jax.block_until_ready(out)
    present = jax.block_until_ready(present)

    out_ref, present_ref = block_forward_ref(x, params, n_head=H,
                                             scale=True, eps=1e-5)

    assert out.shape == (B, T, C)
    assert present.shape == (2, B, H, T, C // H)
    np.testing.assert_allclose(np.asarray(out), np.asarray(out_ref),
                               rtol=rtol, atol=atol)
    np.testing.assert_allclose(np.asarray(present), np.asarray(present_ref),
                               rtol=rtol, atol=atol)


if __name__ == "__main__":
    key = jax.random.PRNGKey(0)
    k1, k2, k3 = jax.random.split(key, 3)

    # small GPT config: n_embd=32, n_head=4, n_ctx=8, batch=2 (single q-tile)
    _run_case(k1, B=2, T=8, C=32, H=4)

    # multi-tile path: two 256-row query tiles, incremental K/V + causal
    # key-tile skipping via the online-softmax fori_loop
    _run_case(k2, B=1, T=512, C=128, H=2, q_tile=256)

    # batch>1 with multiple query tiles and 4 heads (hd=32)
    _run_case(k3, B=2, T=256, C=128, H=4, q_tile=128)

    print("KERNEL_OK")
</pallas_src>

<mosaic_0001>
module attributes {stable_mosaic.version = 11 : i64} {
  func.func @block_kernel(%arg0: i32, %arg1: i32, %arg2: memref<1x8x32xf32, #tpu.memory_space<vmem>>, %arg3: memref<1x32xf32, #tpu.memory_space<vmem>>, %arg4: memref<1x32xf32, #tpu.memory_space<vmem>>, %arg5: memref<32x96xbf16, #tpu.memory_space<vmem>>, %arg6: memref<1x96xf32, #tpu.memory_space<vmem>>, %arg7: memref<32x32xbf16, #tpu.memory_space<vmem>>, %arg8: memref<1x32xf32, #tpu.memory_space<vmem>>, %arg9: memref<1x32xf32, #tpu.memory_space<vmem>>, %arg10: memref<1x32xf32, #tpu.memory_space<vmem>>, %arg11: memref<32x128xbf16, #tpu.memory_space<vmem>>, %arg12: memref<1x128xf32, #tpu.memory_space<vmem>>, %arg13: memref<128x32xbf16, #tpu.memory_space<vmem>>, %arg14: memref<1x32xf32, #tpu.memory_space<vmem>>, %arg15: memref<1x8x32xf32, #tpu.memory_space<vmem>>, %arg16: memref<2x1x8x32xbf16, #tpu.memory_space<vmem>>, %arg17: memref<8x64xbf16, #tpu.memory_space<vmem>>, %arg18: memref<8x32xf32, #tpu.memory_space<vmem>>) attributes {dimension_semantics = [#tpu.dimension_semantics<parallel>, #tpu.dimension_semantics<arbitrary>], iteration_bounds = array<i64: 2, 1>, scalar_prefetch = 0 : i64, scratch_operands = 2 : i64, tpu.core_type = #tpu.core_type<tc>, window_params = [{transform_indices = @transform_0, window_bounds = array<i64: 1, 8, 32>}, {pipeline_mode = #tpu.pipeline_mode<synchronous>, transform_indices = @transform_1, window_bounds = array<i64: 1, 32>}, {pipeline_mode = #tpu.pipeline_mode<synchronous>, transform_indices = @transform_2, window_bounds = array<i64: 1, 32>}, {pipeline_mode = #tpu.pipeline_mode<synchronous>, transform_indices = @transform_3, window_bounds = array<i64: 32, 96>}, {pipeline_mode = #tpu.pipeline_mode<synchronous>, transform_indices = @transform_4, window_bounds = array<i64: 1, 96>}, {pipeline_mode = #tpu.pipeline_mode<synchronous>, transform_indices = @transform_5, window_bounds = array<i64: 32, 32>}, {pipeline_mode = #tpu.pipeline_mode<synchronous>, transform_indices = @transform_6, window_bounds = array<i64: 1, 32>}, {pipeline_mode = #tpu.pipeline_mode<synchronous>, transform_indices = @transform_7, window_bounds = array<i64: 1, 32>}, {pipeline_mode = #tpu.pipeline_mode<synchronous>, transform_indices = @transform_8, window_bounds = array<i64: 1, 32>}, {pipeline_mode = #tpu.pipeline_mode<synchronous>, transform_indices = @transform_9, window_bounds = array<i64: 32, 128>}, {pipeline_mode = #tpu.pipeline_mode<synchronous>, transform_indices = @transform_10, window_bounds = array<i64: 1, 128>}, {pipeline_mode = #tpu.pipeline_mode<synchronous>, transform_indices = @transform_11, window_bounds = array<i64: 128, 32>}, {pipeline_mode = #tpu.pipeline_mode<synchronous>, transform_indices = @transform_12, window_bounds = array<i64: 1, 32>}, {transform_indices = @transform_13, window_bounds = array<i64: 1, 8, 32>}, {transform_indices = @transform_14, window_bounds = array<i64: 2, 1, 8, 32>}]} {
    %c0 = arith.constant 0 : index
    %c0_0 = arith.constant 0 : index
    %c0_1 = arith.constant 0 : index
    %0 = vector.load %arg2[%c0, %c0_0, %c0_1] : memref<1x8x32xf32, #tpu.memory_space<vmem>>, vector<1x8x32xf32>
    %1 = vector.shape_cast %0 : vector<1x8x32xf32> to vector<8x32xf32>
    %c0_2 = arith.constant 0 : index
    %c0_3 = arith.constant 0 : index
    %2 = vector.load %arg3[%c0_2, %c0_3] : memref<1x32xf32, #tpu.memory_space<vmem>>, vector<1x32xf32>
    %c0_4 = arith.constant 0 : index
    %c0_5 = arith.constant 0 : index
    %3 = vector.load %arg4[%c0_4, %c0_5] : memref<1x32xf32, #tpu.memory_space<vmem>>, vector<1x32xf32>
    %cst = arith.constant dense<0.000000e+00> : vector<8xf32>
    %4 = vector.multi_reduction <add>, %1, %cst [1] : vector<8x32xf32> to vector<8xf32>
    %5 = vector.shape_cast %4 : vector<8xf32> to vector<8x1xf32>
    %cst_6 = arith.constant 3.200000e+01 : f32
    %6 = vector.broadcast %cst_6 : f32 to vector<8x1xf32>
    %7 = arith.divf %5, %6 : vector<8x1xf32>
    %8 = vector.broadcast %7 : vector<8x1xf32> to vector<8x32xf32>
    %9 = arith.subf %1, %8 : vector<8x32xf32>
    %10 = arith.mulf %9, %9 : vector<8x32xf32>
    %cst_7 = arith.constant dense<0.000000e+00> : vector<8xf32>
    %11 = vector.multi_reduction <add>, %10, %cst_7 [1] : vector<8x32xf32> to vector<8xf32>
    %12 = vector.shape_cast %11 : vector<8xf32> to vector<8x1xf32>
    %cst_8 = arith.constant 3.200000e+01 : f32
    %13 = vector.broadcast %cst_8 : f32 to vector<8x1xf32>
    %14 = arith.divf %12, %13 : vector<8x1xf32>
    %15 = vector.broadcast %7 : vector<8x1xf32> to vector<8x32xf32>
    %16 = arith.subf %1, %15 : vector<8x32xf32>
    %cst_9 = arith.constant 9.99999974E-6 : f32
    %17 = vector.broadcast %cst_9 : f32 to vector<8x1xf32>
    %18 = arith.addf %14, %17 : vector<8x1xf32>
    %19 = math.rsqrt %18 : vector<8x1xf32>
    %20 = vector.broadcast %19 : vector<8x1xf32> to vector<8x32xf32>
    %21 = arith.mulf %16, %20 : vector<8x32xf32>
    %22 = vector.broadcast %2 : vector<1x32xf32> to vector<8x32xf32>
    %23 = arith.mulf %22, %21 : vector<8x32xf32>
    %24 = vector.broadcast %3 : vector<1x32xf32> to vector<8x32xf32>
    %25 = arith.addf %23, %24 : vector<8x32xf32>
    %26 = arith.truncf %25 : vector<8x32xf32> to vector<8x32xbf16>
    %c0_10 = arith.constant 0 : index
    %c0_11 = arith.constant 0 : index
    %27 = vector.load %arg5[%c0_10, %c0_11] : memref<32x96xbf16, #tpu.memory_space<vmem>>, vector<32x96xbf16>
    %cst_12 = arith.constant dense<0.000000e+00> : vector<8x96xf32>
    %28 = tpu.matmul %26, %27, %cst_12 {dimension_numbers = #tpu.dot_dimension_numbers<[1], [0], [0], [1], [0, 0, 1, 1], [], []>} : vector<8x32xbf16>, vector<32x96xbf16>, vector<8x96xf32> -> vector<8x96xf32>
    %c0_13 = arith.constant 0 : index
    %c0_14 = arith.constant 0 : index
    %29 = vector.load %arg6[%c0_13, %c0_14] : memref<1x96xf32, #tpu.memory_space<vmem>>, vector<1x96xf32>
    %30 = vector.broadcast %29 : vector<1x96xf32> to vector<8x96xf32>
    %31 = arith.addf %28, %30 : vector<8x96xf32>
    %32 = vector.extract_strided_slice %31 {offsets = [0, 32], sizes = [8, 64], strides = [1, 1]} : vector<8x96xf32> to vector<8x64xf32>
    %33 = arith.truncf %32 : vector<8x64xf32> to vector<8x64xbf16>
    %c8_i32 = arith.constant 8 : i32
    %34 = arith.muli %arg1, %c8_i32 : i32
    %35 = tpu.assume_multiple %34, 8 : i32
    %36 = arith.index_cast %35 : i32 to index
    %c0_15 = arith.constant 0 : index
    %37 = vector.load %arg17[%36, %c0_15] : memref<8x64xbf16, #tpu.memory_space<vmem>>, vector<8x64xbf16>
    tpu.vector_store %arg17[%36, %c0_15], %33 {strides = array<i32>} : memref<8x64xbf16, #tpu.memory_space<vmem>>, vector<8x64xbf16>,
    %38 = vector.extract_strided_slice %33 {offsets = [0, 0], sizes = [8, 32], strides = [1, 1]} : vector<8x64xbf16> to vector<8x32xbf16>
    %c0_16 = arith.constant 0 : index
    %c0_17 = arith.constant 0 : index
    %c0_18 = arith.constant 0 : index
    %c0_19 = arith.constant 0 : index
    %39 = vector.load %arg16[%c0_16, %c0_17, %c0_18, %c0_19] : memref<2x1x8x32xbf16, #tpu.memory_space<vmem>>, vector<1x1x8x32xbf16>
    %40 = vector.shape_cast %39 : vector<1x1x8x32xbf16> to vector<8x32xbf16>
    %41 = vector.shape_cast %38 : vector<8x32xbf16> to vector<1x1x8x32xbf16>
    tpu.vector_store %arg16[%c0_16, %c0_17, %c0_18, %c0_19], %41 {strides = array<i32>} : memref<2x1x8x32xbf16, #tpu.memory_space<vmem>>, vector<1x1x8x32xbf16>,
    %42 = vector.extract_strided_slice %33 {offsets = [0, 32], sizes = [8, 32], strides = [1, 1]} : vector<8x64xbf16> to vector<8x32xbf16>
    %c1 = arith.constant 1 : index
    %c0_20 = arith.constant 0 : index
    %c0_21 = arith.constant 0 : index
    %c0_22 = arith.constant 0 : index
    %43 = vector.load %arg16[%c1, %c0_20, %c0_21, %c0_22] : memref<2x1x8x32xbf16, #tpu.memory_space<vmem>>, vector<1x1x8x32xbf16>
    %44 = vector.shape_cast %43 : vector<1x1x8x32xbf16> to vector<8x32xbf16>
    %45 = vector.shape_cast %42 : vector<8x32xbf16> to vector<1x1x8x32xbf16>
    tpu.vector_store %arg16[%c1, %c0_20, %c0_21, %c0_22], %45 {strides = array<i32>} : memref<2x1x8x32xbf16, #tpu.memory_space<vmem>>, vector<1x1x8x32xbf16>,
    %46 = vector.extract_strided_slice %31 {offsets = [0, 0], sizes = [8, 32], strides = [1, 1]} : vector<8x96xf32> to vector<8x32xf32>
    %cst_23 = arith.constant 0.353553385 : f32
    %47 = vector.broadcast %cst_23 : f32 to vector<8x32xf32>
    %48 = arith.mulf %46, %47 : vector<8x32xf32>
    %49 = arith.truncf %48 : vector<8x32xf32> to vector<8x32xbf16>
    %c8_i32_24 = arith.constant 8 : i32
    %50 = arith.muli %arg1, %c8_i32_24 : i32
    %51 = tpu.iota {dimensions = array<i32: 0>} : vector<8x8xi32>
    %52 = vector.broadcast %50 : i32 to vector<8x8xi32>
    %53 = arith.addi %52, %51 : vector<8x8xi32>
    %54 = vector.extract_strided_slice %49 {offsets = [0, 0], sizes = [8, 8], strides = [1, 1]} : vector<8x32xbf16> to vector<8x8xbf16>
    %cst_25 = arith.constant -1.000000e+30 : f32
    %55 = vector.broadcast %cst_25 : f32 to vector<8x1xf32>
    %cst_26 = arith.constant 0.000000e+00 : f32
    %56 = vector.broadcast %cst_26 : f32 to vector<8x1xf32>
    %cst_27 = arith.constant 0.000000e+00 : f32
    %57 = vector.broadcast %cst_27 : f32 to vector<8x8xf32>
    %c1_i32 = arith.constant 1 : i32
    %58 = arith.addi %arg1, %c1_i32 : i32
    %c0_i32 = arith.constant 0 : i32
    %59 = arith.subi %58, %c0_i32 : i32
    %60 = arith.addi %c0_i32, %59 : i32
    %c1_i32_28 = arith.constant 1 : i32
    %61:3 = scf.for %arg19 = %c0_i32 to %60 step %c1_i32_28 iter_args(%arg20 = %55, %arg21 = %56, %arg22 = %57) -> (vector<8x1xf32>, vector<8x1xf32>, vector<8x8xf32>)  : i32 {
      %c8_i32_85 = arith.constant 8 : i32
      %163 = arith.muli %arg19, %c8_i32_85 : i32
      %164 = tpu.assume_multiple %163, 8 : i32
      %165 = arith.index_cast %164 : i32 to index
      %c0_86 = arith.constant 0 : index
      %166 = vector.load %arg17[%165, %c0_86] : memref<8x64xbf16, #tpu.memory_space<vmem>>, vector<8x64xbf16>
      %167 = vector.extract_strided_slice %166 {offsets = [0, 0], sizes = [8, 8], strides = [1, 1]} : vector<8x64xbf16> to vector<8x8xbf16>
      %168 = vector.extract_strided_slice %166 {offsets = [0, 32], sizes = [8, 8], strides = [1, 1]} : vector<8x64xbf16> to vector<8x8xbf16>
      %cst_87 = arith.constant dense<0.000000e+00> : vector<8x8xf32>
      %169 = tpu.matmul %54, %167, %cst_87 {dimension_numbers = #tpu.dot_dimension_numbers<[1], [1], [0], [0], [0, 0, 1, 0], [], []>} : vector<8x8xbf16>, vector<8x8xbf16>, vector<8x8xf32> -> vector<8x8xf32>
      %c8_i32_88 = arith.constant 8 : i32
      %170 = arith.muli %arg19, %c8_i32_88 : i32
      %171 = tpu.iota {dimensions = array<i32: 1>} : vector<8x8xi32>
      %172 = vector.broadcast %170 : i32 to vector<8x8xi32>
      %173 = arith.addi %172, %171 : vector<8x8xi32>
      %174 = arith.cmpi sge, %53, %173 : vector<8x8xi32>
      %cst_89 = arith.constant -1.000000e+10 : f32
      %175 = vector.broadcast %cst_89 : f32 to vector<8x8xf32>
      %176 = arith.select %174, %169, %175 : vector<8x8xi1>, vector<8x8xf32>
      %cst_90 = arith.constant dense<0xFF800000> : vector<8xf32>
      %177 = vector.multi_reduction <maximumf>, %176, %cst_90 [1] : vector<8x8xf32> to vector<8xf32>
      %178 = vector.shape_cast %177 : vector<8xf32> to vector<8x1xf32>
      %179 = arith.maximumf %arg20, %178 : vector<8x1xf32>
      %180 = arith.subf %arg20, %179 : vector<8x1xf32>
      %181 = math.exp %180 : vector<8x1xf32>
      %182 = vector.broadcast %179 : vector<8x1xf32> to vector<8x8xf32>
      %183 = arith.subf %176, %182 : vector<8x8xf32>
      %184 = math.exp %183 : vector<8x8xf32>
      %185 = arith.mulf %181, %arg21 : vector<8x1xf32>
      %cst_91 = arith.constant dense<0.000000e+00> : vector<8xf32>
      %186 = vector.multi_reduction <add>, %184, %cst_91 [1] : vector<8x8xf32> to vector<8xf32>
      %187 = vector.shape_cast %186 : vector<8xf32> to vector<8x1xf32>
      %188 = arith.addf %185, %187 : vector<8x1xf32>
      %189 = vector.broadcast %181 : vector<8x1xf32> to vector<8x8xf32>
      %190 = arith.mulf %189, %arg22 : vector<8x8xf32>
      %191 = arith.truncf %184 : vector<8x8xf32> to vector<8x8xbf16>
      %cst_92 = arith.constant dense<0.000000e+00> : vector<8x8xf32>
      %192 = tpu.matmul %191, %168, %cst_92 {dimension_numbers = #tpu.dot_dimension_numbers<[1], [0], [0], [1], [0, 0, 1, 1], [], []>} : vector<8x8xbf16>, vector<8x8xbf16>, vector<8x8xf32> -> vector<8x8xf32>
      %193 = arith.addf %190, %192 : vector<8x8xf32>
      scf.yield %179, %188, %193 : vector<8x1xf32>, vector<8x1xf32>, vector<8x8xf32>
    }
    %62 = tpu.reciprocal %61#1 {approx = true} : vector<8x1xf32> -> vector<8x1xf32>
    %63 = vector.broadcast %62 : vector<8x1xf32> to vector<8x8xf32>
    %64 = arith.mulf %61#2, %63 : vector<8x8xf32>
    %c0_29 = arith.constant 0 : index
    %c0_30 = arith.constant 0 : index
    %65 = vector.load %arg18[%c0_29, %c0_30] : memref<8x32xf32, #tpu.memory_space<vmem>>, vector<8x8xf32>
    tpu.vector_store %arg18[%c0_29, %c0_30], %64 {strides = array<i32>} : memref<8x32xf32, #tpu.memory_space<vmem>>, vector<8x8xf32>,
    %66 = vector.extract_strided_slice %49 {offsets = [0, 8], sizes = [8, 8], strides = [1, 1]} : vector<8x32xbf16> to vector<8x8xbf16>
    %cst_31 = arith.constant -1.000000e+30 : f32
    %67 = vector.broadcast %cst_31 : f32 to vector<8x1xf32>
    %cst_32 = arith.constant 0.000000e+00 : f32
    %68 = vector.broadcast %cst_32 : f32 to vector<8x1xf32>
    %cst_33 = arith.constant 0.000000e+00 : f32
    %69 = vector.broadcast %cst_33 : f32 to vector<8x8xf32>
    %c1_i32_34 = arith.constant 1 : i32
    %70 = arith.addi %arg1, %c1_i32_34 : i32
    %c0_i32_35 = arith.constant 0 : i32
    %71 = arith.subi %70, %c0_i32_35 : i32
    %72 = arith.addi %c0_i32_35, %71 : i32
    %c1_i32_36 = arith.constant 1 : i32
    %73:3 = scf.for %arg19 = %c0_i32_35 to %72 step %c1_i32_36 iter_args(%arg20 = %67, %arg21 = %68, %arg22 = %69) -> (vector<8x1xf32>, vector<8x1xf32>, vector<8x8xf32>)  : i32 {
      %c8_i32_85 = arith.constant 8 : i32
      %163 = arith.muli %arg19, %c8_i32_85 : i32
      %164 = tpu.assume_multiple %163, 8 : i32
      %165 = arith.index_cast %164 : i32 to index
      %c0_86 = arith.constant 0 : index
      %166 = vector.load %arg17[%165, %c0_86] : memref<8x64xbf16, #tpu.memory_space<vmem>>, vector<8x64xbf16>
      %167 = vector.extract_strided_slice %166 {offsets = [0, 8], sizes = [8, 8], strides = [1, 1]} : vector<8x64xbf16> to vector<8x8xbf16>
      %168 = vector.extract_strided_slice %166 {offsets = [0, 40], sizes = [8, 8], strides = [1, 1]} : vector<8x64xbf16> to vector<8x8xbf16>
      %cst_87 = arith.constant dense<0.000000e+00> : vector<8x8xf32>
      %169 = tpu.matmul %66, %167, %cst_87 {dimension_numbers = #tpu.dot_dimension_numbers<[1], [1], [0], [0], [0, 0, 1, 0], [], []>} : vector<8x8xbf16>, vector<8x8xbf16>, vector<8x8xf32> -> vector<8x8xf32>
      %c8_i32_88 = arith.constant 8 : i32
      %170 = arith.muli %arg19, %c8_i32_88 : i32
      %171 = tpu.iota {dimensions = array<i32: 1>} : vector<8x8xi32>
      %172 = vector.broadcast %170 : i32 to vector<8x8xi32>
      %173 = arith.addi %172, %171 : vector<8x8xi32>
      %174 = arith.cmpi sge, %53, %173 : vector<8x8xi32>
      %cst_89 = arith.constant -1.000000e+10 : f32
      %175 = vector.broadcast %cst_89 : f32 to vector<8x8xf32>
      %176 = arith.select %174, %169, %175 : vector<8x8xi1>, vector<8x8xf32>
      %cst_90 = arith.constant dense<0xFF800000> : vector<8xf32>
      %177 = vector.multi_reduction <maximumf>, %176, %cst_90 [1] : vector<8x8xf32> to vector<8xf32>
      %178 = vector.shape_cast %177 : vector<8xf32> to vector<8x1xf32>
      %179 = arith.maximumf %arg20, %178 : vector<8x1xf32>
      %180 = arith.subf %arg20, %179 : vector<8x1xf32>
      %181 = math.exp %180 : vector<8x1xf32>
      %182 = vector.broadcast %179 : vector<8x1xf32> to vector<8x8xf32>
      %183 = arith.subf %176, %182 : vector<8x8xf32>
      %184 = math.exp %183 : vector<8x8xf32>
      %185 = arith.mulf %181, %arg21 : vector<8x1xf32>
      %cst_91 = arith.constant dense<0.000000e+00> : vector<8xf32>
      %186 = vector.multi_reduction <add>, %184, %cst_91 [1] : vector<8x8xf32> to vector<8xf32>
      %187 = vector.shape_cast %186 : vector<8xf32> to vector<8x1xf32>
      %188 = arith.addf %185, %187 : vector<8x1xf32>
      %189 = vector.broadcast %181 : vector<8x1xf32> to vector<8x8xf32>
      %190 = arith.mulf %189, %arg22 : vector<8x8xf32>
      %191 = arith.truncf %184 : vector<8x8xf32> to vector<8x8xbf16>
      %cst_92 = arith.constant dense<0.000000e+00> : vector<8x8xf32>
      %192 = tpu.matmul %191, %168, %cst_92 {dimension_numbers = #tpu.dot_dimension_numbers<[1], [0], [0], [1], [0, 0, 1, 1], [], []>} : vector<8x8xbf16>, vector<8x8xbf16>, vector<8x8xf32> -> vector<8x8xf32>
      %193 = arith.addf %190, %192 : vector<8x8xf32>
      scf.yield %179, %188, %193 : vector<8x1xf32>, vector<8x1xf32>, vector<8x8xf32>
    }
    %74 = tpu.reciprocal %73#1 {approx = true} : vector<8x1xf32> -> vector<8x1xf32>
    %75 = vector.broadcast %74 : vector<8x1xf32> to vector<8x8xf32>
    %76 = arith.mulf %73#2, %75 : vector<8x8xf32>
    %c0_37 = arith.constant 0 : index
    %c8 = arith.constant 8 : index
    %77 = vector.load %arg18[%c0_37, %c8] : memref<8x32xf32, #tpu.memory_space<vmem>>, vector<8x8xf32>
    tpu.vector_store %arg18[%c0_37, %c8], %76 {strides = array<i32>} : memref<8x32xf32, #tpu.memory_space<vmem>>, vector<8x8xf32>,
    %78 = vector.extract_strided_slice %49 {offsets = [0, 16], sizes = [8, 8], strides = [1, 1]} : vector<8x32xbf16> to vector<8x8xbf16>
    %cst_38 = arith.constant -1.000000e+30 : f32
    %79 = vector.broadcast %cst_38 : f32 to vector<8x1xf32>
    %cst_39 = arith.constant 0.000000e+00 : f32
    %80 = vector.broadcast %cst_39 : f32 to vector<8x1xf32>
    %cst_40 = arith.constant 0.000000e+00 : f32
    %81 = vector.broadcast %cst_40 : f32 to vector<8x8xf32>
    %c1_i32_41 = arith.constant 1 : i32
    %82 = arith.addi %arg1, %c1_i32_41 : i32
    %c0_i32_42 = arith.constant 0 : i32
    %83 = arith.subi %82, %c0_i32_42 : i32
    %84 = arith.addi %c0_i32_42, %83 : i32
    %c1_i32_43 = arith.constant 1 : i32
    %85:3 = scf.for %arg19 = %c0_i32_42 to %84 step %c1_i32_43 iter_args(%arg20 = %79, %arg21 = %80, %arg22 = %81) -> (vector<8x1xf32>, vector<8x1xf32>, vector<8x8xf32>)  : i32 {
      %c8_i32_85 = arith.constant 8 : i32
      %163 = arith.muli %arg19, %c8_i32_85 : i32
      %164 = tpu.assume_multiple %163, 8 : i32
      %165 = arith.index_cast %164 : i32 to index
      %c0_86 = arith.constant 0 : index
      %166 = vector.load %arg17[%165, %c0_86] : memref<8x64xbf16, #tpu.memory_space<vmem>>, vector<8x64xbf16>
      %167 = vector.extract_strided_slice %166 {offsets = [0, 16], sizes = [8, 8], strides = [1, 1]} : vector<8x64xbf16> to vector<8x8xbf16>
      %168 = vector.extract_strided_slice %166 {offsets = [0, 48], sizes = [8, 8], strides = [1, 1]} : vector<8x64xbf16> to vector<8x8xbf16>
      %cst_87 = arith.constant dense<0.000000e+00> : vector<8x8xf32>
      %169 = tpu.matmul %78, %167, %cst_87 {dimension_numbers = #tpu.dot_dimension_numbers<[1], [1], [0], [0], [0, 0, 1, 0], [], []>} : vector<8x8xbf16>, vector<8x8xbf16>, vector<8x8xf32> -> vector<8x8xf32>
      %c8_i32_88 = arith.constant 8 : i32
      %170 = arith.muli %arg19, %c8_i32_88 : i32
      %171 = tpu.iota {dimensions = array<i32: 1>} : vector<8x8xi32>
      %172 = vector.broadcast %170 : i32 to vector<8x8xi32>
      %173 = arith.addi %172, %171 : vector<8x8xi32>
      %174 = arith.cmpi sge, %53, %173 : vector<8x8xi32>
      %cst_89 = arith.constant -1.000000e+10 : f32
      %175 = vector.broadcast %cst_89 : f32 to vector<8x8xf32>
      %176 = arith.select %174, %169, %175 : vector<8x8xi1>, vector<8x8xf32>
      %cst_90 = arith.constant dense<0xFF800000> : vector<8xf32>
      %177 = vector.multi_reduction <maximumf>, %176, %cst_90 [1] : vector<8x8xf32> to vector<8xf32>
      %178 = vector.shape_cast %177 : vector<8xf32> to vector<8x1xf32>
      %179 = arith.maximumf %arg20, %178 : vector<8x1xf32>
      %180 = arith.subf %arg20, %179 : vector<8x1xf32>
      %181 = math.exp %180 : vector<8x1xf32>
      %182 = vector.broadcast %179 : vector<8x1xf32> to vector<8x8xf32>
      %183 = arith.subf %176, %182 : vector<8x8xf32>
      %184 = math.exp %183 : vector<8x8xf32>
      %185 = arith.mulf %181, %arg21 : vector<8x1xf32>
      %cst_91 = arith.constant dense<0.000000e+00> : vector<8xf32>
      %186 = vector.multi_reduction <add>, %184, %cst_91 [1] : vector<8x8xf32> to vector<8xf32>
      %187 = vector.shape_cast %186 : vector<8xf32> to vector<8x1xf32>
      %188 = arith.addf %185, %187 : vector<8x1xf32>
      %189 = vector.broadcast %181 : vector<8x1xf32> to vector<8x8xf32>
      %190 = arith.mulf %189, %arg22 : vector<8x8xf32>
      %191 = arith.truncf %184 : vector<8x8xf32> to vector<8x8xbf16>
      %cst_92 = arith.constant dense<0.000000e+00> : vector<8x8xf32>
      %192 = tpu.matmul %191, %168, %cst_92 {dimension_numbers = #tpu.dot_dimension_numbers<[1], [0], [0], [1], [0, 0, 1, 1], [], []>} : vector<8x8xbf16>, vector<8x8xbf16>, vector<8x8xf32> -> vector<8x8xf32>
      %193 = arith.addf %190, %192 : vector<8x8xf32>
      scf.yield %179, %188, %193 : vector<8x1xf32>, vector<8x1xf32>, vector<8x8xf32>
    }
    %86 = tpu.reciprocal %85#1 {approx = true} : vector<8x1xf32> -> vector<8x1xf32>
    %87 = vector.broadcast %86 : vector<8x1xf32> to vector<8x8xf32>
    %88 = arith.mulf %85#2, %87 : vector<8x8xf32>
    %c0_44 = arith.constant 0 : index
    %c16 = arith.constant 16 : index
    %89 = vector.load %arg18[%c0_44, %c16] : memref<8x32xf32, #tpu.memory_space<vmem>>, vector<8x8xf32>
    tpu.vector_store %arg18[%c0_44, %c16], %88 {strides = array<i32>} : memref<8x32xf32, #tpu.memory_space<vmem>>, vector<8x8xf32>,
    %90 = vector.extract_strided_slice %49 {offsets = [0, 24], sizes = [8, 8], strides = [1, 1]} : vector<8x32xbf16> to vector<8x8xbf16>
    %cst_45 = arith.constant -1.000000e+30 : f32
    %91 = vector.broadcast %cst_45 : f32 to vector<8x1xf32>
    %cst_46 = arith.constant 0.000000e+00 : f32
    %92 = vector.broadcast %cst_46 : f32 to vector<8x1xf32>
    %cst_47 = arith.constant 0.000000e+00 : f32
    %93 = vector.broadcast %cst_47 : f32 to vector<8x8xf32>
    %c1_i32_48 = arith.constant 1 : i32
    %94 = arith.addi %arg1, %c1_i32_48 : i32
    %c0_i32_49 = arith.constant 0 : i32
    %95 = arith.subi %94, %c0_i32_49 : i32
    %96 = arith.addi %c0_i32_49, %95 : i32
    %c1_i32_50 = arith.constant 1 : i32
    %97:3 = scf.for %arg19 = %c0_i32_49 to %96 step %c1_i32_50 iter_args(%arg20 = %91, %arg21 = %92, %arg22 = %93) -> (vector<8x1xf32>, vector<8x1xf32>, vector<8x8xf32>)  : i32 {
      %c8_i32_85 = arith.constant 8 : i32
      %163 = arith.muli %arg19, %c8_i32_85 : i32
      %164 = tpu.assume_multiple %163, 8 : i32
      %165 = arith.index_cast %164 : i32 to index
      %c0_86 = arith.constant 0 : index
      %166 = vector.load %arg17[%165, %c0_86] : memref<8x64xbf16, #tpu.memory_space<vmem>>, vector<8x64xbf16>
      %167 = vector.extract_strided_slice %166 {offsets = [0, 24], sizes = [8, 8], strides = [1, 1]} : vector<8x64xbf16> to vector<8x8xbf16>
      %168 = vector.extract_strided_slice %166 {offsets = [0, 56], sizes = [8, 8], strides = [1, 1]} : vector<8x64xbf16> to vector<8x8xbf16>
      %cst_87 = arith.constant dense<0.000000e+00> : vector<8x8xf32>
      %169 = tpu.matmul %90, %167, %cst_87 {dimension_numbers = #tpu.dot_dimension_numbers<[1], [1], [0], [0], [0, 0, 1, 0], [], []>} : vector<8x8xbf16>, vector<8x8xbf16>, vector<8x8xf32> -> vector<8x8xf32>
      %c8_i32_88 = arith.constant 8 : i32
      %170 = arith.muli %arg19, %c8_i32_88 : i32
      %171 = tpu.iota {dimensions = array<i32: 1>} : vector<8x8xi32>
      %172 = vector.broadcast %170 : i32 to vector<8x8xi32>
      %173 = arith.addi %172, %171 : vector<8x8xi32>
      %174 = arith.cmpi sge, %53, %173 : vector<8x8xi32>
      %cst_89 = arith.constant -1.000000e+10 : f32
      %175 = vector.broadcast %cst_89 : f32 to vector<8x8xf32>
      %176 = arith.select %174, %169, %175 : vector<8x8xi1>, vector<8x8xf32>
      %cst_90 = arith.constant dense<0xFF800000> : vector<8xf32>
      %177 = vector.multi_reduction <maximumf>, %176, %cst_90 [1] : vector<8x8xf32> to vector<8xf32>
      %178 = vector.shape_cast %177 : vector<8xf32> to vector<8x1xf32>
      %179 = arith.maximumf %arg20, %178 : vector<8x1xf32>
      %180 = arith.subf %arg20, %179 : vector<8x1xf32>
      %181 = math.exp %180 : vector<8x1xf32>
      %182 = vector.broadcast %179 : vector<8x1xf32> to vector<8x8xf32>
      %183 = arith.subf %176, %182 : vector<8x8xf32>
      %184 = math.exp %183 : vector<8x8xf32>
      %185 = arith.mulf %181, %arg21 : vector<8x1xf32>
      %cst_91 = arith.constant dense<0.000000e+00> : vector<8xf32>
      %186 = vector.multi_reduction <add>, %184, %cst_91 [1] : vector<8x8xf32> to vector<8xf32>
      %187 = vector.shape_cast %186 : vector<8xf32> to vector<8x1xf32>
      %188 = arith.addf %185, %187 : vector<8x1xf32>
      %189 = vector.broadcast %181 : vector<8x1xf32> to vector<8x8xf32>
      %190 = arith.mulf %189, %arg22 : vector<8x8xf32>
      %191 = arith.truncf %184 : vector<8x8xf32> to vector<8x8xbf16>
      %cst_92 = arith.constant dense<0.000000e+00> : vector<8x8xf32>
      %192 = tpu.matmul %191, %168, %cst_92 {dimension_numbers = #tpu.dot_dimension_numbers<[1], [0], [0], [1], [0, 0, 1, 1], [], []>} : vector<8x8xbf16>, vector<8x8xbf16>, vector<8x8xf32> -> vector<8x8xf32>
      %193 = arith.addf %190, %192 : vector<8x8xf32>
      scf.yield %179, %188, %193 : vector<8x1xf32>, vector<8x1xf32>, vector<8x8xf32>
    }
    %98 = tpu.reciprocal %97#1 {approx = true} : vector<8x1xf32> -> vector<8x1xf32>
    %99 = vector.broadcast %98 : vector<8x1xf32> to vector<8x8xf32>
    %100 = arith.mulf %97#2, %99 : vector<8x8xf32>
    %c0_51 = arith.constant 0 : index
    %c24 = arith.constant 24 : index
    %101 = vector.load %arg18[%c0_51, %c24] : memref<8x32xf32, #tpu.memory_space<vmem>>, vector<8x8xf32>
    tpu.vector_store %arg18[%c0_51, %c24], %100 {strides = array<i32>} : memref<8x32xf32, #tpu.memory_space<vmem>>, vector<8x8xf32>,
    %c0_52 = arith.constant 0 : index
    %c0_53 = arith.constant 0 : index
    %102 = vector.load %arg18[%c0_52, %c0_53] : memref<8x32xf32, #tpu.memory_space<vmem>>, vector<8x32xf32>
    %103 = arith.truncf %102 : vector<8x32xf32> to vector<8x32xbf16>
    %c0_54 = arith.constant 0 : index
    %c0_55 = arith.constant 0 : index
    %104 = vector.load %arg7[%c0_54, %c0_55] : memref<32x32xbf16, #tpu.memory_space<vmem>>, vector<32x32xbf16>
    %cst_56 = arith.constant dense<0.000000e+00> : vector<8x32xf32>
    %105 = tpu.matmul %103, %104, %cst_56 {dimension_numbers = #tpu.dot_dimension_numbers<[1], [0], [0], [1], [0, 0, 1, 1], [], []>} : vector<8x32xbf16>, vector<32x32xbf16>, vector<8x32xf32> -> vector<8x32xf32>
    %c0_57 = arith.constant 0 : index
    %c0_58 = arith.constant 0 : index
    %106 = vector.load %arg8[%c0_57, %c0_58] : memref<1x32xf32, #tpu.memory_space<vmem>>, vector<1x32xf32>
    %107 = vector.broadcast %106 : vector<1x32xf32> to vector<8x32xf32>
    %108 = arith.addf %105, %107 : vector<8x32xf32>
    %109 = arith.addf %1, %108 : vector<8x32xf32>
    %c0_59 = arith.constant 0 : index
    %c0_60 = arith.constant 0 : index
    %110 = vector.load %arg9[%c0_59, %c0_60] : memref<1x32xf32, #tpu.memory_space<vmem>>, vector<1x32xf32>
    %c0_61 = arith.constant 0 : index
    %c0_62 = arith.constant 0 : index
    %111 = vector.load %arg10[%c0_61, %c0_62] : memref<1x32xf32, #tpu.memory_space<vmem>>, vector<1x32xf32>
    %cst_63 = arith.constant dense<0.000000e+00> : vector<8xf32>
    %112 = vector.multi_reduction <add>, %109, %cst_63 [1] : vector<8x32xf32> to vector<8xf32>
    %113 = vector.shape_cast %112 : vector<8xf32> to vector<8x1xf32>
    %cst_64 = arith.constant 3.200000e+01 : f32
    %114 = vector.broadcast %cst_64 : f32 to vector<8x1xf32>
    %115 = arith.divf %113, %114 : vector<8x1xf32>
    %116 = vector.broadcast %115 : vector<8x1xf32> to vector<8x32xf32>
    %117 = arith.subf %109, %116 : vector<8x32xf32>
    %118 = arith.mulf %117, %117 : vector<8x32xf32>
    %cst_65 = arith.constant dense<0.000000e+00> : vector<8xf32>
    %119 = vector.multi_reduction <add>, %118, %cst_65 [1] : vector<8x32xf32> to vector<8xf32>
    %120 = vector.shape_cast %119 : vector<8xf32> to vector<8x1xf32>
    %cst_66 = arith.constant 3.200000e+01 : f32
    %121 = vector.broadcast %cst_66 : f32 to vector<8x1xf32>
    %122 = arith.divf %120, %121 : vector<8x1xf32>
    %123 = vector.broadcast %115 : vector<8x1xf32> to vector<8x32xf32>
    %124 = arith.subf %109, %123 : vector<8x32xf32>
    %cst_67 = arith.constant 9.99999974E-6 : f32
    %125 = vector.broadcast %cst_67 : f32 to vector<8x1xf32>
    %126 = arith.addf %122, %125 : vector<8x1xf32>
    %127 = math.rsqrt %126 : vector<8x1xf32>
    %128 = vector.broadcast %127 : vector<8x1xf32> to vector<8x32xf32>
    %129 = arith.mulf %124, %128 : vector<8x32xf32>
    %130 = vector.broadcast %110 : vector<1x32xf32> to vector<8x32xf32>
    %131 = arith.mulf %130, %129 : vector<8x32xf32>
    %132 = vector.broadcast %111 : vector<1x32xf32> to vector<8x32xf32>
    %133 = arith.addf %131, %132 : vector<8x32xf32>
    %134 = arith.truncf %133 : vector<8x32xf32> to vector<8x32xbf16>
    %c0_68 = arith.constant 0 : index
    %c0_69 = arith.constant 0 : index
    %135 = vector.load %arg11[%c0_68, %c0_69] : memref<32x128xbf16, #tpu.memory_space<vmem>>, vector<32x128xbf16>
    %cst_70 = arith.constant dense<0.000000e+00> : vector<8x128xf32>
    %136 = tpu.matmul %134, %135, %cst_70 {dimension_numbers = #tpu.dot_dimension_numbers<[1], [0], [0], [1], [0, 0, 1, 1], [], []>} : vector<8x32xbf16>, vector<32x128xbf16>, vector<8x128xf32> -> vector<8x128xf32>
    %c0_71 = arith.constant 0 : index
    %c0_72 = arith.constant 0 : index
    %137 = vector.load %arg12[%c0_71, %c0_72] : memref<1x128xf32, #tpu.memory_space<vmem>>, vector<1x128xf32>
    %138 = vector.broadcast %137 : vector<1x128xf32> to vector<8x128xf32>
    %139 = arith.addf %136, %138 : vector<8x128xf32>
    %cst_73 = arith.constant 5.000000e-01 : f32
    %140 = vector.broadcast %cst_73 : f32 to vector<8x128xf32>
    %141 = arith.mulf %140, %139 : vector<8x128xf32>
    %142 = arith.mulf %139, %139 : vector<8x128xf32>
    %143 = arith.mulf %142, %139 : vector<8x128xf32>
    %cst_74 = arith.constant 4.471500e-02 : f32
    %144 = vector.broadcast %cst_74 : f32 to vector<8x128xf32>
    %145 = arith.mulf %144, %143 : vector<8x128xf32>
    %146 = arith.addf %139, %145 : vector<8x128xf32>
    %cst_75 = arith.constant 0.797884583 : f32
    %147 = vector.broadcast %cst_75 : f32 to vector<8x128xf32>
    %148 = arith.mulf %147, %146 : vector<8x128xf32>
    %149 = math.tanh %148 : vector<8x128xf32>
    %cst_76 = arith.constant 1.000000e+00 : f32
    %150 = vector.broadcast %cst_76 : f32 to vector<8x128xf32>
    %151 = arith.addf %150, %149 : vector<8x128xf32>
    %152 = arith.mulf %141, %151 : vector<8x128xf32>
    %153 = arith.truncf %152 : vector<8x128xf32> to vector<8x128xbf16>
    %c0_77 = arith.constant 0 : index
    %c0_78 = arith.constant 0 : index
    %154 = vector.load %arg13[%c0_77, %c0_78] : memref<128x32xbf16, #tpu.memory_space<vmem>>, vector<128x32xbf16>
    %cst_79 = arith.constant dense<0.000000e+00> : vector<8x32xf32>
    %155 = tpu.matmul %153, %154, %cst_79 {dimension_numbers = #tpu.dot_dimension_numbers<[1], [0], [0], [1], [0, 0, 1, 1], [], []>} : vector<8x128xbf16>, vector<128x32xbf16>, vector<8x32xf32> -> vector<8x32xf32>
    %c0_80 = arith.constant 0 : index
    %c0_81 = arith.constant 0 : index
    %156 = vector.load %arg14[%c0_80, %c0_81] : memref<1x32xf32, #tpu.memory_space<vmem>>, vector<1x32xf32>
    %157 = vector.broadcast %156 : vector<1x32xf32> to vector<8x32xf32>
    %158 = arith.addf %155, %157 : vector<8x32xf32>
    %159 = arith.addf %109, %158 : vector<8x32xf32>
    %c0_82 = arith.constant 0 : index
    %c0_83 = arith.constant 0 : index
    %c0_84 = arith.constant 0 : index
    %160 = vector.load %arg15[%c0_82, %c0_83, %c0_84] : memref<1x8x32xf32, #tpu.memory_space<vmem>>, vector<1x8x32xf32>
    %161 = vector.shape_cast %160 : vector<1x8x32xf32> to vector<8x32xf32>
    %162 = vector.shape_cast %159 : vector<8x32xf32> to vector<1x8x32xf32>
    tpu.vector_store %arg15[%c0_82, %c0_83, %c0_84], %162 {strides = array<i32>} : memref<1x8x32xf32, #tpu.memory_space<vmem>>, vector<1x8x32xf32>,
    return
  }
  func.func @transform_0(%arg0: i32, %arg1: i32) -> (i32, i32, i32) {
    %c0_i32 = arith.constant 0 : i32
    %c0_i32_0 = arith.constant 0 : i32
    return %arg0, %arg1, %c0_i32 : i32, i32, i32
  }
  func.func @transform_1(%arg0: i32, %arg1: i32) -> (i32, i32) {
    %c0_i32 = arith.constant 0 : i32
    %c0_i32_0 = arith.constant 0 : i32
    %c0_i32_1 = arith.constant 0 : i32
    return %c0_i32, %c0_i32_0 : i32, i32
  }
  func.func @transform_2(%arg0: i32, %arg1: i32) -> (i32, i32) {
    %c0_i32 = arith.constant 0 : i32
    %c0_i32_0 = arith.constant 0 : i32
    %c0_i32_1 = arith.constant 0 : i32
    return %c0_i32, %c0_i32_0 : i32, i32
  }
  func.func @transform_3(%arg0: i32, %arg1: i32) -> (i32, i32) {
    %c0_i32 = arith.constant 0 : i32
    %c0_i32_0 = arith.constant 0 : i32
    %c0_i32_1 = arith.constant 0 : i32
    return %c0_i32, %c0_i32_0 : i32, i32
  }
  func.func @transform_4(%arg0: i32, %arg1: i32) -> (i32, i32) {
    %c0_i32 = arith.constant 0 : i32
    %c0_i32_0 = arith.constant 0 : i32
    %c0_i32_1 = arith.constant 0 : i32
    return %c0_i32, %c0_i32_0 : i32, i32
  }
  func.func @transform_5(%arg0: i32, %arg1: i32) -> (i32, i32) {
    %c0_i32 = arith.constant 0 : i32
    %c0_i32_0 = arith.constant 0 : i32
    %c0_i32_1 = arith.constant 0 : i32
    return %c0_i32, %c0_i32_0 : i32, i32
  }
  func.func @transform_6(%arg0: i32, %arg1: i32) -> (i32, i32) {
    %c0_i32 = arith.constant 0 : i32
    %c0_i32_0 = arith.constant 0 : i32
    %c0_i32_1 = arith.constant 0 : i32
    return %c0_i32, %c0_i32_0 : i32, i32
  }
  func.func @transform_7(%arg0: i32, %arg1: i32) -> (i32, i32) {
    %c0_i32 = arith.constant 0 : i32
    %c0_i32_0 = arith.constant 0 : i32
    %c0_i32_1 = arith.constant 0 : i32
    return %c0_i32, %c0_i32_0 : i32, i32
  }
  func.func @transform_8(%arg0: i32, %arg1: i32) -> (i32, i32) {
    %c0_i32 = arith.constant 0 : i32
    %c0_i32_0 = arith.constant 0 : i32
    %c0_i32_1 = arith.constant 0 : i32
    return %c0_i32, %c0_i32_0 : i32, i32
  }
  func.func @transform_9(%arg0: i32, %arg1: i32) -> (i32, i32) {
    %c0_i32 = arith.constant 0 : i32
    %c0_i32_0 = arith.constant 0 : i32
    %c0_i32_1 = arith.constant 0 : i32
    return %c0_i32, %c0_i32_0 : i32, i32
  }
  func.func @transform_10(%arg0: i32, %arg1: i32) -> (i32, i32) {
    %c0_i32 = arith.constant 0 : i32
    %c0_i32_0 = arith.constant 0 : i32
    %c0_i32_1 = arith.constant 0 : i32
    return %c0_i32, %c0_i32_0 : i32, i32
  }
  func.func @transform_11(%arg0: i32, %arg1: i32) -> (i32, i32) {
    %c0_i32 = arith.constant 0 : i32
    %c0_i32_0 = arith.constant 0 : i32
    %c0_i32_1 = arith.constant 0 : i32
    return %c0_i32, %c0_i32_0 : i32, i32
  }
  func.func @transform_12(%arg0: i32, %arg1: i32) -> (i32, i32) {
    %c0_i32 = arith.constant 0 : i32
    %c0_i32_0 = arith.constant 0 : i32
    %c0_i32_1 = arith.constant 0 : i32
    return %c0_i32, %c0_i32_0 : i32, i32
  }
  func.func @transform_13(%arg0: i32, %arg1: i32) -> (i32, i32, i32) {
    %c0_i32 = arith.constant 0 : i32
    %c0_i32_0 = arith.constant 0 : i32
    return %arg0, %arg1, %c0_i32 : i32, i32, i32
  }
  func.func @transform_14(%arg0: i32, %arg1: i32) -> (i32, i32, i32, i32) {
    %c0_i32 = arith.constant 0 : i32
    %c0_i32_0 = arith.constant 0 : i32
    %c0_i32_1 = arith.constant 0 : i32
    return %c0_i32, %arg0, %arg1, %c0_i32_0 : i32, i32, i32, i32
  }
}

</mosaic_0001>

<bundles_post_ra>
// kernel: tpu_custom_call.1
= control target key start
LH: loop header
LB: loop body
LE: loop exit
PB: predicated region body
PF: predicated region fallthrough
CT: control target
= control target key end

     0   :  { %s2904_s0 = inlined_call_operand.vmem [shape: f32[2,8,32], index: 0, kind: input, shape index: {}]   ;;  %s2905_s1 = inlined_call_operand.vmem [shape: f32[1,32], index: 1, kind: input, shape index: {}]   ;;  %s2906_s2 = inlined_call_operand.vmem [shape: f32[1,32], index: 2, kind: input, shape index: {}]   ;;  %s2907_s3 = inlined_call_operand.vmem [shape: bf16[32,96], index: 3, kind: input, shape index: {}]   ;;  %s2908_s4 = inlined_call_operand.vmem [shape: f32[1,96], index: 4, kind: input, shape index: {}]   ;;  %s2909_s5 = inlined_call_operand.vmem [shape: bf16[32,32], index: 5, kind: input, shape index: {}]   ;;  %s2910_s6 = inlined_call_operand.vmem [shape: f32[1,32], index: 6, kind: input, shape index: {}]   ;;  %s2911_s7 = inlined_call_operand.vmem [shape: f32[1,32], index: 7, kind: input, shape index: {}]   ;;  %s2912_s8 = inlined_call_operand.vmem [shape: f32[1,32], index: 8, kind: input, shape index: {}]   ;;  %s2913_s9 = inlined_call_operand.vmem [shape: bf16[32,128], index: 9, kind: input, shape index: {}]   ;;  %s2914_s10 = inlined_call_operand.vmem [shape: f32[1,128], index: 10, kind: input, shape index: {}]   ;;  %s2915_s11 = inlined_call_operand.vmem [shape: bf16[128,32], index: 11, kind: input, shape index: {}]   ;;  %s2916_s12 = inlined_call_operand.vmem [shape: f32[1,32], index: 12, kind: input, shape index: {}]   ;;  %s2917_s13 = inlined_call_operand.hbm [shape: f32[2,8,32], index: 13, kind: output, shape index: {0}]   ;;  %s2918_s14 = inlined_call_operand.hbm [shape: bf16[2,2,8,32], index: 14, kind: output, shape index: {1}]  }
   0x1   :  { %2921 = sst [smem:[#allocation11_spill]] %s2904_s0 }
   0x2   :  { %2922 = sst [smem:[#allocation12_spill]] %s2905_s1 }
   0x3   :  { %2923 = sst [smem:[#allocation13_spill]] %s2906_s2 }
   0x4   :  { %2924 = sst [smem:[#allocation14_spill]] %s2907_s3 }
   0x5   :  { %2925 = sst [smem:[#allocation15_spill]] %s2908_s4 }
   0x6   :  { %2926 = sst [smem:[#allocation16_spill]] %s2909_s5 }
   0x7   :  { %2927 = sst [smem:[#allocation17_spill]] %s2910_s6 }
   0x8   :  { %2928 = sst [smem:[#allocation18_spill]] %s2911_s7 }
   0x9   :  { %20 = vsyncpa [#allocation5], 0 }
   0xa   :  { %22 = vsyncpa [#allocation5 + $0x1], 0 }
   0xb   :  { %23 = vsyncpa [#allocation7], 0 }
   0xc   :  { %25 = vsyncpa [#allocation7 + $0x1], 0  ;;  %s2500_s29 = smov 0   ;;  %s2502_s30 = smov 0  }
   0xd   :  { %s2504_s15 = smov 0   ;;  %s2506_s16 = smov 0  }
   0xe   :  { %s2508_s17 = smov 0   ;;  %s2510_s18 = smov 0  }
   0xf LB: > { %s1715_s19 = sadd.s32 4294967295, %s2333_s18   ;;  %s1716_s20 = sadd.s32 4294967294, %s2333_s18   ;;  %s2333_s18 = sphi %s2510_s18, %s31_s18   ;;  %s2329_s17 = sphi %s2508_s17, %s2959_s17   ;;  %s2325_s16 = sphi %s2506_s16, %s2958_s16   ;;  %s2321_s15 = sphi %s2504_s15, %s2957_s15   ;;  %s2317_s30 = sphi %s2502_s30, %s2956_s30   ;;  %s2313_s29 = sphi %s2500_s29, %s2955_s29  }
  0x10   : > { %s43_s21 = sadd.s32 1, %s2329_s17  ;;  %s332_s22 = sadd.s32 1, %s2321_s15 }
  0x11   : > { %p45_p0 = scmp.ge.s32.totalorder %s43_s21, 2  ;;  %p342_p1 = scmp.ne.s32.totalorder %s2321_s15, %s2317_s30 }
  0x12   : > { %p343_p2 = scmp.eq.s32.totalorder %s1715_s19, 1  ;;  %p348_p3 = scmp.ne.s32.totalorder %s2317_s30, %s2313_s29 }
  0x13   : > { %s2961_s21 = smov (%p45_p0, %s43_s21), 0  ;;  %p349_p5 = scmp.eq.s32.totalorder %s1716_s20, 1 }
  0x14   : > { %2929 = sst [smem:[#allocation10_spill]] %s2961_s21  ;;  %p2540_p4 = por %p343_p2, %p342_p1 }
  0x15   : > { %s327_s24 = ssub.s32 %s2329_s17, %s2961_s21  ;;  %p1719_p6 = scmp.ge.s32.totalorder %s2333_s18, 1 }
  0x16   : > { %p330_p7 = scmp.eq.s32.totalorder %s327_s24, 0  ;;  %p2547_p8 = por %p349_p5, %p348_p3 }
  0x17   : > { %p441_p9 = scmp.lt.s32.totalorder %s2333_s18, 3 }
  0x18   : > { %s2553_s26 = scalar_select %p330_p7, %s2321_s15, %s332_s22  }
  0x19   : > { %p442_p10 = pnand %p1719_p6, %p441_p9 }
  0x1a   : > { %p494_p11 = scmp.lt.s32.totalorder (!%p442_p10), %s2325_s16, 1  ;;  %s2932_s0 = sld [smem:[#allocation11_spill]] (!%p442_p10) }
  0x1b   : > { %445 = sbr.rel (%p442_p10) target bundleno = 4571 (0x11db), region = 72  ;;  %s2933_s3 = sld [smem:[#allocation14_spill]] (!%p442_p10) }
  0x1c   : > { %s2934_s1 = sld [smem:[#allocation12_spill]] (!%p442_p10)  ;;  %s2584_s24 = sand.u32 (!%p442_p10), 1, %s2317_s30  }
  0x1d   : > { %s2935_s2 = sld [smem:[#allocation13_spill]] (!%p442_p10)  ;;  %s2401_s19 = smov (!%p442_p10), 96  }
  0x1e   : > { %s2936_s4 = sld [smem:[#allocation15_spill]] (!%p442_p10)  ;;  %s2920_s20 = smov (!%p442_p10), 64  }
  0x20   : > { %s495_s27 = scalar_select %p494_p11, %s2325_s16, 1  ;;  %vm505_vm0 = vcmask 261120   ;;  %v2399_v8 = vmov 0.0   ;;  %vm2400_vm1 = vmmov 0   ;;  %v624_v20 = vlaneseq }
  0x21   : > { %v2115_v7 = vld [vmem:[%s2933_s3 + $0x8] sm:$0xff]   ;;  %1811 = vmatprep.subr.bf16.mxu0 %v2399_v8  ;;  %1815 = vmatprep.mubr.msk.bf16.mxu0 %vm2400_vm1, %v2399_v8  ;;  %v2116_v9 = vld [vmem:[%s2933_s3] sm:$0xff]   ;;  %vm613_vm2 = vcmask 519168   ;;  %vm615_vm3 = vcmask 257024   ;;  %v2602_v33 = vmov 0.0   ;;  %v2604_v34 = vmov 0.0  }
  0x22   : > { %s1722_s28 = sshll.u32 %s495_s27, 3  ;;  %1812 = vmatpush3.bf16.msra.mxu0 %v2115_v7  ;;  %v1723_v14 = vld [vmem:[%s2934_s1] ss:$0 sm:$0xff]  ;;  %v2588_v21 = vshrl.u32 %v624_v20, 7  ;;  %v2606_v35 = vmov -1e+30  }
  0x23   : > { %s500_s21 = scalar_lea.vmem %s2932_s0, %s1722_s28  ;;  %1813 = vmatprep.subr.bf16.mxu0 %v2399_v8  ;;  %v1724_v16 = vld [vmem:[%s2935_s2] ss:$0 sm:$0xff]  ;;  %s2608_s28 = smov 0  }
  0x24   : > { %v2560_v0 = vld [vmem:[%s500_s21] sm:$0xff]  ;;  %s1720_s21 = sshll.u32 %s2584_s24, 3 }
  0x25   : > { %v506_v1 = vsel %vm505_vm0, %v2560_v0, 0.0  ;;  %v1725_v22 = vld [vmem:[%s2936_s4] ss:$0 sm:$0xff]  ;;  %s2596_s22 = scalar_lea.vmem [#allocation6], %s1720_s21  ;;  %s2600_s27 = scalar_lea.vmem [#allocation4], %s1720_s21 }
  0x26   : > { %507 = vadd.xlane.f32.xlu0 %v506_v1  ;;  %1814 = vmatpush3.bf16.msra.mxu0 %v2116_v9 }
  0xaf   : > { %v508_v2 = vpop.xlane.xlu0 %507 }
  0xb0   : > { %v510_v3 = vmul.f32 0.03125, %v508_v2 }
  0xb2   : > { %v511_v4 = vsub.f32 %v2560_v0, %v510_v3 }
  0xb4   : > { %v512_v5 = vmul.f32 %v511_v4, %v511_v4 }
  0xb6   : > { %v513_v6 = vsel %vm505_vm0, %v512_v5, 0.0 }
  0xb7   : > { %514 = vadd.xlane.f32.xlu0 %v513_v6 }
 0x140   : > { %v515_v10 = vpop.xlane.xlu0 %514 }
 0x141   : > { %v516_v11 = vmul.f32 0.03125, %v515_v10 }
 0x143   : > { %v517_v12 = vadd.f32 1e-05, %v516_v11 }
 0x145   : > { %2117 = vrsqrt.f32 %v517_v12 }
 0x152   : > { %v2118_v13 = vpop.eup %2117 }
 0x153   : > { %v519_v15 = vmul.f32 %v2118_v13, %v511_v4 }
 0x155   : > { %v526_v17 = vmul.f32 %v1723_v14, %v519_v15 }
 0x157   : > { %v533_v18 = vadd.f32 %v1724_v16, %v526_v17 }
 0x159   : > { %v534_v19 = vpack.c.bf16 %v533_v18, %v533_v18 }
 0x15b   : > { %1816 = vmatmul.mubr.msk.bf16.vlgmr.msra.gmra.mxu0 %vm505_vm0, %v534_v19 }
 0x21b   : > { %v595_v23 = vpop.f32.mrf.mxu0 }
 0x21c   : > { %v596_v24 = vadd.f32 %v1725_v22, %v595_v23 }
 0x21d   : > { %v1817_v25 = vpop.f32.mrf.mxu0 }
 0x21e   : > { %v622_v26 = vmul.f32 0.35355338, %v596_v24  ;;  %v1776_v27 = vpack.c.bf16 %v596_v24, %v596_v24 }
 0x21f   : > { %v598_v28 = vpop.f32.mrf.mxu0 }
 0x220   : > { %v2593_v29 = vpack.c.bf16 %v622_v26, %v622_v26  ;;  %606 = vrot.lane.b32.xlu1 %v1776_v27, %s2401_s19 }
 0x221   : > { %v1818_v30 = vpop.f32.mrf.mxu0 }
 0x224   : > { %617 = vrot.lane.b32.xlu1 %v1776_v27, %s2920_s20 }
 0x292   : > { %v607_v31 = vpop.permute.xlu1 %606 }
 0x293   : > { %614 = vst.msk [vmem:[#allocation2] sm:$0xf] %vm613_vm2, %v607_v31 }
 0x294   : > { %616 = vst.msk [vmem:[%s2596_s22] sm:$0xf] %vm615_vm3, %v607_v31 }
 0x296   : > { %v618_v32 = vpop.permute.xlu1 %617 }
 0x297   : > { %1730 = vst.msk [vmem:[%s2596_s22 + $0x4] sm:$0xf] %vm615_vm3, %v618_v32 }
 0x298 LB: >> { %v2403_v36 = vmov 0.0   ;;  %vm2404_vm4 = vmmov 0   ;;  %s1731_s21 = sshll.u32 %s2349_s28, 3  ;;  %vm644_vm5 = vcmask 64512   ;;  %v2621_v39 = vand.u32 127, %v624_v20  ;;  %s632_s28 = sadd.s32 1, %s2349_s28   ;;  %s2349_s28 = sphi %s2608_s28, %s632_s28   ;;  %v2345_v35 = vphi %v2606_v35, %v2939_v35   ;;  %v2341_v34 = vphi %v2604_v34, %v2938_v34   ;;  %v2337_v33 = vphi %v2602_v33, %v2937_v33  }
 0x299   : >> { %1819 = vmatprep.subr.bf16.mxu0 %v2403_v36  ;;  %1821 = vmatprep.mubr.msk.bf16.mxu0 %vm2404_vm4, %v2403_v36  ;;  %s639_s19 = sshra.s32 %s1731_s21, 3  ;;  %v693_v40 = vstv %s1731_s21  ;;  %vm722_vm7 = vcmask 1043456   ;;  %p631_p12 = scmp.ge.s32.totalorder %s632_s28, 1 }
 0x29a   : >> { %1825 = vmatprep.subr.bf16.mxu1 %v2403_v36  ;;  %1827 = vmatprep.mubr.msk.bf16.mxu1 %vm2404_vm4, %v2403_v36  ;;  %s1732_s20 = sshll.u32 %s639_s19, 2  ;;  %v694_v41 = vadd.s32 %v693_v40, %v2621_v39  ;;  %v2639_v10 = vmov (%p631_p12), 0.0   ;;  %v2641_v11 = vmov (%p631_p12), 0.0   ;;  %v2643_v12 = vmov (%p631_p12), -1e+30  }
 0x29b   : >> { %s642_s0 = scalar_lea.vmem [#allocation2], %s1732_s20  ;;  %s2645_s20 = smov (%p631_p12), 0  }
 0x29c   : >> { %v643_v37 = vld [vmem:[%s642_s0] sm:$0xf]  ;;  %vm695_vm6 = vcmp.ge.s32.totalorder %v2588_v21, %v694_v41  ;;  %s2405_s0 = smov 96  }
 0x29d   : >> { %v649_v38 = vsel %vm644_vm5, %v643_v37, 0  ;;  %v1734_v48 = vcombine.low %v643_v37, %v643_v37 }
 0x29e   : >> { %1820 = vmatpush3.bf16.xpose.msra.mxu0 %v649_v38 }
 0x2a5   : >> { %1822 = vmatmul.mubr.msk.bf16.vlgmr.msra.gmra.mxu0 %vm644_vm5, %v2593_v29 }
 0x365   : >> { %v685_v42 = vpop.f32.mrf.mxu0 }
 0x366   : >> { %v696_v43 = vsel %vm695_vm6, %v685_v42, -1e+10 }
 0x367   : >> { %v1823_v44 = vpop.f32.mrf.mxu0  ;;  %v697_v45 = vsel %vm644_vm5, %v696_v43, -inf }
 0x368   : >> { %698 = vmax.xlane.f32.xlu0 %v697_v45 }
 0x369   : >> { %v688_v46 = vpop.f32.mrf.mxu0 }
 0x36b   : >> { %v1824_v47 = vpop.f32.mrf.mxu0 }
 0x37e   : >> { %717 = vrot.lane.b32.xlu0 %v1734_v48, %s2405_s0 }
 0x3f1   : >> { %v699_v49 = vpop.xlane.xlu0 %698 }
 0x3f2   : >> { %v700_v50 = vmax.f32 %v2345_v35, %v699_v49  }
 0x3f4   : >> { %v701_v51 = vsub.f32 %v2345_v35, %v700_v50  ;;  %v704_v52 = vsub.f32 %v696_v43, %v700_v50  ;;  %v2939_v35 = vmov %v700_v50 }
 0x3f5   : >> { %v718_v53 = vpop.permute.xlu0 %717 }
 0x3f6   : >> { %v705_v54 = vmul.f32 1.442695, %v704_v52  ;;  %v724_v55 = vsel %vm722_vm7, %v718_v53, 0  ;;  %v702_v59 = vmul.f32 1.442695, %v701_v51 }
 0x3f7   : >> { %1826 = vmatpush3.bf16.msra.mxu1 %v724_v55 }
 0x3f8   : >> { %2120 = vpow2.f32 %v705_v54 }
 0x3f9   : >> { %2122 = vpow2.f32 %v702_v59 }
 0x405   : >> { %v2121_v56 = vpop.eup %2120 }
 0x406   : >> { %v708_v57 = vsel %vm644_vm5, %v2121_v56, 0.0  ;;  %v713_v58 = vpack.c.bf16 %v2121_v56, %v2121_v56  ;;  %v2123_v60 = vpop.eup %2122 }
 0x407   : >> { %709 = vadd.xlane.f32.xlu1 %v708_v57  ;;  %v707_v61 = vmul.f32 %v2341_v34, %v2123_v60  ;;  %v712_v1 = vmul.f32 %v2337_v33, %v2123_v60 }
 0x408   : >> { %1828 = vmatmul.mubr.msk.bf16.vlgmr.msra.gmra.mxu1 %vm644_vm5, %v713_v58 }
 0x490   : >> { %v710_v62 = vpop.xlane.xlu1 %709 }
 0x491   : >> { %v711_v63 = vadd.f32 %v710_v62, %v707_v61  }
 0x493   : >> { %v2938_v34 = vmov %v711_v63  ;;  %2124 = vrcp.f32 (%p631_p12), %v711_v63 }
 0x4a0   : > { %v2125_v7 = vpop.eup (%p631_p12), %2124 }
 0x4c8   : >> { %v760_v2 = vpop.f32.mrf.mxu1 }
 0x4c9   : >> { %v766_v3 = vadd.f32 %v760_v2, %v712_v1  }
 0x4ca   : >> { %v1829_v4 = vpop.f32.mrf.mxu1  ;;  %634 = sbr.rel (!%p631_p12) target bundleno = 664 (0x298), region = 158 }
 0x4cb   : >> { %v2937_v33 = vmov %v766_v3  ;;  %v768_v9 = vmul.f32 (%p631_p12), %v2125_v7, %v766_v3 }
 0x4cc   : >> { %v763_v5 = vpop.f32.mrf.mxu1 }
 0x4cd   : > { %770 = vst.msk [vmem:[#allocation3] sm:$0xff] (%p631_p12), %vm644_vm5, %v768_v9 }
 0x4ce   : >> { %v1830_v6 = vpop.f32.mrf.mxu1 }
 0x4cf LB: >> { %v2406_v13 = vmov 0.0   ;;  %vm2407_vm8 = vmmov 0   ;;  %s1736_s28 = sshll.u32 %s2365_s20, 3  ;;  %s2408_s1 = smov 120   ;;  %s2365_s20 = sphi %s2645_s20, %s774_s20   ;;  %v2361_v12 = vphi %v2643_v12, %v2942_v12   ;;  %v2357_v11 = vphi %v2641_v11, %v2941_v11   ;;  %v2353_v10 = vphi %v2639_v10, %v2940_v10  }
 0x4d0   : >> { %1831 = vmatprep.subr.bf16.mxu0 %v2406_v13  ;;  %1833 = vmatprep.mubr.msk.bf16.mxu0 %vm2407_vm8, %v2406_v13  ;;  %s781_s21 = sshra.s32 %s1736_s28, 3  ;;  %v842_v18 = vstv %s1736_s28  ;;  %s774_s20 = sadd.s32 1, %s2365_s20  }
 0x4d1   : >> { %1837 = vmatprep.subr.bf16.mxu1 %v2406_v13  ;;  %1839 = vmatprep.mubr.msk.bf16.mxu1 %vm2407_vm8, %v2406_v13  ;;  %s1737_s19 = sshll.u32 %s781_s21, 2  ;;  %v843_v19 = vadd.s32 %v842_v18, %v2621_v39  ;;  %p773_p13 = scmp.ge.s32.totalorder %s774_s20, 1 }
 0x4d2   : >> { %s784_s0 = scalar_lea.vmem [#allocation2], %s1737_s19  ;;  %s2410_s28 = smov (%p773_p13), 8   ;;  %vm919_vm10 = vcmask (%p773_p13), 130112   ;;  %v2672_v53 = vmov (%p773_p13), 0.0   ;;  %v2674_v54 = vmov (%p773_p13), 0.0  }
 0x4d3   : >> { %v2126_v14 = vld [vmem:[%s784_s0] ss:$0 sps:$4 sm:$0xff]   ;;  %vm844_vm9 = vcmp.ge.s32.totalorder %v2588_v21, %v843_v19  ;;  %v2676_v55 = vmov (%p773_p13), -1e+30   ;;  %s2678_s21 = smov (%p773_p13), 0  }
 0x4d4   : >> { %792 = vrot.lane.b32.xlu0 %v2126_v14, %s2408_s1 }
 0x4d8   : >> { %787 = vrot.lane.b32.xlu0 %v2593_v29, %s2408_s1  ;;  %s2409_s1 = smov 88  }
 0x546   : >> { %v793_v15 = vpop.permute.xlu0 %792 }
 0x547   : >> { %v798_v16 = vsel %vm644_vm5, %v793_v15, 0 }
 0x548   : >> { %1832 = vmatpush3.bf16.xpose.msra.mxu0 %v798_v16 }
 0x54a   : >> { %v788_v17 = vpop.permute.xlu0 %787 }
 0x54f   : >> { %1834 = vmatmul.mubr.msk.bf16.vlgmr.msra.gmra.mxu0 %vm644_vm5, %v788_v17 }
 0x60f   : >> { %v834_v20 = vpop.f32.mrf.mxu0 }
 0x610   : >> { %v845_v22 = vsel %vm844_vm9, %v834_v20, -1e+10 }
 0x611   : >> { %v1835_v23 = vpop.f32.mrf.mxu0  ;;  %v846_v24 = vsel %vm644_vm5, %v845_v22, -inf }
 0x612   : >> { %847 = vmax.xlane.f32.xlu1 %v846_v24 }
 0x613   : >> { %v837_v25 = vpop.f32.mrf.mxu0 }
 0x615   : >> { %v1836_v26 = vpop.f32.mrf.mxu0 }
 0x623   : >> { %863 = vrot.lane.b32.xlu1 %v2126_v14, %s2409_s1 }
 0x69b   : >> { %v848_v27 = vpop.xlane.xlu1 %847 }
 0x69c   : >> { %v849_v28 = vmax.f32 %v2361_v12, %v848_v27  }
 0x69e   : >> { %v850_v30 = vsub.f32 %v2361_v12, %v849_v28  ;;  %v853_v31 = vsub.f32 %v845_v22, %v849_v28  ;;  %v2942_v12 = vmov %v849_v28 }
 0x69f   : >> { %v864_v32 = vpop.permute.xlu1 %863 }
 0x6a0   : >> { %v854_v33 = vmul.f32 1.442695, %v853_v31  ;;  %v870_v34 = vsel %vm722_vm7, %v864_v32, 0  ;;  %v851_v38 = vmul.f32 1.442695, %v850_v30 }
 0x6a1   : >> { %1838 = vmatpush3.bf16.msra.mxu1 %v870_v34 }
 0x6a2   : >> { %2127 = vpow2.f32 %v854_v33 }
 0x6a3   : >> { %2129 = vpow2.f32 %v851_v38 }
 0x6af   : >> { %v2128_v35 = vpop.eup %2127 }
 0x6b0   : >> { %v857_v36 = vsel %vm644_vm5, %v2128_v35, 0.0  ;;  %v862_v37 = vpack.c.bf16 %v2128_v35, %v2128_v35  ;;  %v2130_v40 = vpop.eup %2129 }
 0x6b1   : >> { %858 = vadd.xlane.f32.xlu0 %v857_v36  ;;  %v856_v41 = vmul.f32 %v2357_v11, %v2130_v40  ;;  %v861_v44 = vmul.f32 %v2353_v10, %v2130_v40 }
 0x6b2   : >> { %1840 = vmatmul.mubr.msk.bf16.vlgmr.msra.gmra.mxu1 %vm644_vm5, %v862_v37 }
 0x73a   : >> { %v859_v42 = vpop.xlane.xlu0 %858 }
 0x73b   : >> { %v860_v43 = vadd.f32 %v859_v42, %v856_v41  }
 0x73d   : >> { %v2941_v11 = vmov %v860_v43  ;;  %2131 = vrcp.f32 (%p773_p13), %v860_v43 }
 0x74a   : > { %v2132_v50 = vpop.eup (%p773_p13), %2131 }
 0x772   : >> { %v906_v45 = vpop.f32.mrf.mxu1 }
 0x773   : >> { %v912_v46 = vadd.f32 %v906_v45, %v861_v44  }
 0x774   : >> { %v1841_v47 = vpop.f32.mrf.mxu1  ;;  %776 = sbr.rel (!%p773_p13) target bundleno = 1231 (0x4cf), region = 169 }
 0x775   : >> { %v2940_v10 = vmov %v912_v46  ;;  %v914_v51 = vmul.f32 (%p773_p13), %v2132_v50, %v912_v46 }
 0x776   : >> { %v909_v48 = vpop.f32.mrf.mxu1 }
 0x777   : > { %916 = vrot.lane.b32.xlu0 (%p773_p13), %v914_v51, %s2410_s28 }
 0x778   : >> { %v1842_v49 = vpop.f32.mrf.mxu1 }
 0x7e9   : > { %v917_v52 = vpop.permute.xlu0 %916 }
 0x7ea   : > { %920 = vst.msk [vmem:[#allocation3] sm:$0xff] %vm919_vm10, %v917_v52 }
 0x7eb LB: >> { %v2411_v56 = vmov 0.0   ;;  %vm2412_vm11 = vmmov 0   ;;  %s1741_s20 = sshll.u32 %s2381_s21, 3  ;;  %s2413_s28 = smov 112   ;;  %s2381_s21 = sphi %s2678_s21, %s924_s21   ;;  %v2377_v55 = vphi %v2676_v55, %v2945_v55   ;;  %v2373_v54 = vphi %v2674_v54, %v2944_v54   ;;  %v2369_v53 = vphi %v2672_v53, %v2943_v53  }
 0x7ec   : >> { %1843 = vmatprep.subr.bf16.mxu0 %v2411_v56  ;;  %1845 = vmatprep.mubr.msk.bf16.mxu0 %vm2412_vm11, %v2411_v56  ;;  %s931_s19 = sshra.s32 %s1741_s20, 3  ;;  %v992_v61 = vstv %s1741_s20  ;;  %s924_s21 = sadd.s32 1, %s2381_s21  }
 0x7ed   : >> { %1849 = vmatprep.subr.bf16.mxu1 %v2411_v56  ;;  %1851 = vmatprep.mubr.msk.bf16.mxu1 %vm2412_vm11, %v2411_v56  ;;  %s1742_s0 = sshll.u32 %s931_s19, 2  ;;  %v993_v62 = vadd.s32 %v992_v61, %v2621_v39  ;;  %s2414_s19 = smov 80  }
 0x7ee   : >> { %s934_s1 = scalar_lea.vmem [#allocation2], %s1742_s0  ;;  %p923_p0 = scmp.ge.s32.totalorder %s924_s21, 1 }
 0x7ef   : >> { %v2133_v57 = vld [vmem:[%s934_s1] ss:$0 sps:$4 sm:$0xff]   ;;  %vm994_vm12 = vcmp.ge.s32.totalorder %v2588_v21, %v993_v62  ;;  %s2415_s20 = smov (%p923_p0), 16   ;;  %vm1069_vm13 = vcmask (%p923_p0), 195712   ;;  %v2705_v33 = vmov (%p923_p0), 0.0   ;;  %v2707_v34 = vmov (%p923_p0), 0.0  }
 0x7f0   : >> { %942 = vrot.lane.b32.xlu0 %v2133_v57, %s2413_s28  ;;  %v2709_v35 = vmov (%p923_p0), -1e+30   ;;  %s2711_s0 = smov (%p923_p0), 0  }
 0x7f4   : >> { %937 = vrot.lane.b32.xlu0 %v2593_v29, %s2413_s28 }
 0x862   : >> { %v943_v58 = vpop.permute.xlu0 %942 }
 0x863   : >> { %v948_v59 = vsel %vm644_vm5, %v943_v58, 0 }
 0x864   : >> { %1844 = vmatpush3.bf16.xpose.msra.mxu0 %v948_v59 }
 0x866   : >> { %v938_v60 = vpop.permute.xlu0 %937 }
 0x86b   : >> { %1846 = vmatmul.mubr.msk.bf16.vlgmr.msra.gmra.mxu0 %vm644_vm5, %v938_v60 }
 0x92b   : >> { %v984_v63 = vpop.f32.mrf.mxu0 }
 0x92c   : >> { %v995_v1 = vsel %vm994_vm12, %v984_v63, -1e+10 }
 0x92d   : >> { %v1847_v2 = vpop.f32.mrf.mxu0  ;;  %v996_v3 = vsel %vm644_vm5, %v995_v1, -inf }
 0x92e   : >> { %997 = vmax.xlane.f32.xlu1 %v996_v3 }
 0x92f   : >> { %v987_v4 = vpop.f32.mrf.mxu0 }
 0x931   : >> { %v1848_v5 = vpop.f32.mrf.mxu0 }
 0x93f   : >> { %1013 = vrot.lane.b32.xlu1 %v2133_v57, %s2414_s19 }
 0x9b7   : >> { %v998_v6 = vpop.xlane.xlu1 %997 }
 0x9b8   : >> { %v999_v7 = vmax.f32 %v2377_v55, %v998_v6  }
 0x9ba   : >> { %v1000_v9 = vsub.f32 %v2377_v55, %v999_v7  ;;  %v1003_v10 = vsub.f32 %v995_v1, %v999_v7  ;;  %v2945_v55 = vmov %v999_v7 }
 0x9bb   : >> { %v1014_v11 = vpop.permute.xlu1 %1013 }
 0x9bc   : >> { %v1004_v12 = vmul.f32 1.442695, %v1003_v10  ;;  %v1020_v13 = vsel %vm722_vm7, %v1014_v11, 0  ;;  %v1001_v17 = vmul.f32 1.442695, %v1000_v9 }
 0x9bd   : >> { %1850 = vmatpush3.bf16.msra.mxu1 %v1020_v13 }
 0x9be   : >> { %2134 = vpow2.f32 %v1004_v12 }
 0x9bf   : >> { %2136 = vpow2.f32 %v1001_v17 }
 0x9cb   : >> { %v2135_v14 = vpop.eup %2134 }
 0x9cc   : >> { %v1007_v15 = vsel %vm644_vm5, %v2135_v14, 0.0  ;;  %v1012_v16 = vpack.c.bf16 %v2135_v14, %v2135_v14  ;;  %v2137_v18 = vpop.eup %2136 }
 0x9cd   : >> { %1008 = vadd.xlane.f32.xlu0 %v1007_v15  ;;  %v1006_v19 = vmul.f32 %v2373_v54, %v2137_v18  ;;  %v1011_v23 = vmul.f32 %v2369_v53, %v2137_v18 }
 0x9ce   : >> { %1852 = vmatmul.mubr.msk.bf16.vlgmr.msra.gmra.mxu1 %vm644_vm5, %v1012_v16 }
 0xa56   : >> { %v1009_v20 = vpop.xlane.xlu0 %1008 }
 0xa57   : >> { %v1010_v22 = vadd.f32 %v1009_v20, %v1006_v19  }
 0xa59   : >> { %v2944_v54 = vmov %v1010_v22  ;;  %2138 = vrcp.f32 (%p923_p0), %v1010_v22 }
 0xa66   : > { %v2139_v30 = vpop.eup (%p923_p0), %2138 }
 0xa8e   : >> { %v1056_v24 = vpop.f32.mrf.mxu1 }
 0xa8f   : >> { %v1062_v25 = vadd.f32 %v1056_v24, %v1011_v23  }
 0xa90   : >> { %v1853_v26 = vpop.f32.mrf.mxu1  ;;  %926 = sbr.rel (!%p923_p0) target bundleno = 2027 (0x7eb), region = 180 }
 0xa91   : >> { %v2943_v53 = vmov %v1062_v25  ;;  %v1064_v31 = vmul.f32 (%p923_p0), %v2139_v30, %v1062_v25 }
 0xa92   : >> { %v1059_v27 = vpop.f32.mrf.mxu1 }
 0xa93   : > { %1066 = vrot.lane.b32.xlu0 (%p923_p0), %v1064_v31, %s2415_s20 }
 0xa94   : >> { %v1854_v28 = vpop.f32.mrf.mxu1 }
 0xb05   : > { %v1067_v32 = vpop.permute.xlu0 %1066 }
 0xb06   : > { %1070 = vst.msk [vmem:[#allocation3] sm:$0xff] %vm1069_vm13, %v1067_v32 }
 0xb07 LB: >> { %v2416_v36 = vmov 0.0   ;;  %vm2417_vm14 = vmmov 0   ;;  %s1746_s21 = sshll.u32 %s2397_s0, 3  ;;  %s2418_s20 = smov 104   ;;  %s2397_s0 = sphi %s2711_s0, %s1074_s0   ;;  %v2393_v35 = vphi %v2709_v35, %v2948_v35   ;;  %v2389_v34 = vphi %v2707_v34, %v2947_v34   ;;  %v2385_v33 = vphi %v2705_v33, %v2946_v33  }
 0xb08   : >> { %1855 = vmatprep.subr.bf16.mxu0 %v2416_v36  ;;  %1857 = vmatprep.mubr.msk.bf16.mxu0 %vm2417_vm14, %v2416_v36  ;;  %s1081_s1 = sshra.s32 %s1746_s21, 3  ;;  %v1142_v42 = vstv %s1746_s21  ;;  %s1074_s0 = sadd.s32 1, %s2397_s0  }
 0xb09   : >> { %1861 = vmatprep.subr.bf16.mxu1 %v2416_v36  ;;  %1863 = vmatprep.mubr.msk.bf16.mxu1 %vm2417_vm14, %v2416_v36  ;;  %s1747_s28 = sshll.u32 %s1081_s1, 2  ;;  %v1143_v43 = vadd.s32 %v1142_v42, %v2621_v39  ;;  %s2419_s1 = smov 72  }
 0xb0a   : >> { %s1084_s19 = scalar_lea.vmem [#allocation2], %s1747_s28  ;;  %p1073_p1 = scmp.ge.s32.totalorder %s1074_s0, 1 }
 0xb0b   : >> { %v2140_v37 = vld [vmem:[%s1084_s19] ss:$0 sps:$4 sm:$0xff]   ;;  %vm1144_vm15 = vcmp.ge.s32.totalorder %v2588_v21, %v1143_v43  ;;  %s2949_s5 = sld [smem:[#allocation16_spill]] (%p1073_p1)  ;;  %s2420_s0 = smov (%p1073_p1), 24   ;;  %vm1219_vm2 = vcmask (%p1073_p1), 261312   ;;  %v2147_v27 = vld [vmem:[%s2913_s9 + $0x8] sm:$0xff] (%p1073_p1)  }
 0xb0c   : >> { %1092 = vrot.lane.b32.xlu0 %v2140_v37, %s2418_s20  ;;  %s2950_s6 = sld [smem:[#allocation17_spill]] (%p1073_p1)  ;;  %v2151_v42 = vld [vmem:[%s2915_s11 + $0x28] sm:$0xff] (%p1073_p1)   ;;  %v2152_v43 = vld [vmem:[%s2915_s11 + $0x20] sm:$0xff] (%p1073_p1)   ;;  %s1773_s2 = sshll.u32 (%p1073_p1), %s2325_s16, 6 }
 0xb0d   : > { %s2951_s7 = sld [smem:[#allocation18_spill]] (%p1073_p1)  ;;  %s2818_s19 = scalar_lea.hbm (%p1073_p1), %s2918_s14, %s1773_s2 }
 0xb10   : >> { %1087 = vrot.lane.b32.xlu0 %v2593_v29, %s2418_s20 }
 0xb11   : > { %v2145_v9 = vld [vmem:[%s2949_s5 + $0x8] sm:$0xff] (%p1073_p1)   ;;  %v2146_v10 = vld [vmem:[%s2949_s5] sm:$0xff] (%p1073_p1)  }
 0xb12   : > { %v1751_v13 = vld [vmem:[%s2950_s6] ss:$0 sm:$0xff] (%p1073_p1) }
 0xb7e   : >> { %v1093_v38 = vpop.permute.xlu0 %1092 }
 0xb7f   : >> { %v1098_v40 = vsel %vm644_vm5, %v1093_v38, 0 }
 0xb80   : >> { %1856 = vmatpush3.bf16.xpose.msra.mxu0 %v1098_v40  ;;  %v2149_v40 = vld [vmem:[%s2915_s11 + $0x38] sm:$0xff] (%p1073_p1)  }
 0xb81   : > { %1883 = vmatprep.subr.bf16.mxu0 (%p1073_p1), %v2399_v8 }
 0xb82   : >> { %v1088_v41 = vpop.permute.xlu0 %1087 }
 0xb87   : >> { %1858 = vmatmul.mubr.msk.bf16.vlgmr.msra.gmra.mxu0 %vm644_vm5, %v1088_v41  ;;  %v2150_v41 = vld [vmem:[%s2915_s11 + $0x30] sm:$0xff] (%p1073_p1)  }
 0xb88   : > { %1899 = vmatprep.mubr.msk.bf16.mxu0 (%p1073_p1), %vm2400_vm1, %v2399_v8  ;;  %1884 = vmatpush3.bf16.msra.mxu0 (%p1073_p1), %v2149_v40 }
 0xb89   : > { %1885 = vmatprep.subr.bf16.mxu0 (%p1073_p1), %v2399_v8 }
 0xb8c   : > { %1886 = vmatpush3.bf16.msra.mxu0 (%p1073_p1), %v2150_v41 }
 0xb8d   : > { %1887 = vmatprep.subr.bf16.mxu0 (%p1073_p1), %v2399_v8 }
 0xb90   : > { %1888 = vmatpush3.bf16.msra.mxu0 (%p1073_p1), %v2151_v42 }
 0xb91   : > { %1889 = vmatprep.subr.bf16.mxu0 (%p1073_p1), %v2399_v8 }
 0xb94   : > { %1890 = vmatpush3.bf16.msra.mxu0 (%p1073_p1), %v2152_v43 }
 0xb95   : > { %1891 = vmatprep.subr.bf16.mxu0 (%p1073_p1), %v2399_v8 }
 0xc47   : >> { %v1134_v44 = vpop.f32.mrf.mxu0 }
 0xc48   : >> { %v1145_v45 = vsel %vm1144_vm15, %v1134_v44, -1e+10  ;;  %v2153_v44 = vld [vmem:[%s2915_s11 + $0x18] sm:$0xff] (%p1073_p1)  }
 0xc49   : >> { %v1859_v46 = vpop.f32.mrf.mxu0  ;;  %v1146_v47 = vsel %vm644_vm5, %v1145_v45, -inf  ;;  %1892 = vmatpush3.bf16.msra.mxu0 (%p1073_p1), %v2153_v44 }
 0xc4a   : >> { %1147 = vmax.xlane.f32.xlu1 %v1146_v47  ;;  %1893 = vmatprep.subr.bf16.mxu0 (%p1073_p1), %v2399_v8  ;;  %v2155_v46 = vld [vmem:[%s2915_s11 + $0x8] sm:$0xff] (%p1073_p1)   ;;  %v2156_v47 = vld [vmem:[%s2915_s11] sm:$0xff] (%p1073_p1)  }
 0xc4b   : >> { %v1137_v48 = vpop.f32.mrf.mxu0 }
 0xc4c   : > { %v1757_v48 = vld [vmem:[%s2914_s10] ss:$0 sm:$0xff] (%p1073_p1) }
 0xc4d   : >> { %v1860_v49 = vpop.f32.mrf.mxu0 }
 0xc5b   : >> { %1163 = vrot.lane.b32.xlu1 %v2140_v37, %s2419_s1  ;;  %s1542_s1 = sshll.u32 (%p1073_p1), %s2596_s22, 4  ;;  %s2820_s1 = int_to_ptr.vmem [resolvable:$true] %s1542_s1 }
 0xc5c   : > { %s2163_s20 = scalar_lea.vmem (%p1073_p1), %s2820_s1, 128 }
 0xc5d   : > { %p2164_p2 = scmp.ne.s32.totalorder (%p1073_p1), %s2820_s1, %s2163_s20 }
 0xc5f   : > { %p2165_p3 = pnand (%p1073_p1), %p2164_p2, %p2540_p4 }
 0xc61   : > { %p2166_p5 = pneg (%p1073_p1), %p2165_p3 }
 0xcd3   : >> { %v1148_v50 = vpop.xlane.xlu1 %1147 }
 0xcd4   : >> { %v1149_v51 = vmax.f32 %v2393_v35, %v1148_v50  }
 0xcd6   : >> { %v1150_v52 = vsub.f32 %v2393_v35, %v1149_v51  ;;  %v1153_v53 = vsub.f32 %v1145_v45, %v1149_v51  ;;  %v2948_v35 = vmov %v1149_v51  ;;  %v2154_v45 = vld [vmem:[%s2915_s11 + $0x10] sm:$0xff] (%p1073_p1)  }
 0xcd7   : >> { %v1164_v54 = vpop.permute.xlu1 %1163  ;;  %v1756_v35 = vld [vmem:[%s2912_s8] ss:$0 sm:$0xff] (%p1073_p1)  ;;  %1894 = vmatpush3.bf16.msra.mxu0 (%p1073_p1), %v2154_v45 }
 0xcd8   : >> { %v1154_v55 = vmul.f32 1.442695, %v1153_v53  ;;  %v1170_v56 = vsel %vm722_vm7, %v1164_v54, 0  ;;  %v1151_v60 = vmul.f32 1.442695, %v1150_v52  ;;  %1895 = vmatprep.subr.bf16.mxu0 (%p1073_p1), %v2399_v8 }
 0xcd9   : >> { %1862 = vmatpush3.bf16.msra.mxu1 %v1170_v56 }
 0xcda   : >> { %2141 = vpow2.f32 %v1154_v55  ;;  %1867 = vmatprep.subr.bf16.mxu1 (%p1073_p1), %v2399_v8 }
 0xcdb   : >> { %2143 = vpow2.f32 %v1151_v60  ;;  %1896 = vmatpush3.bf16.msra.mxu0 (%p1073_p1), %v2155_v46 }
 0xcdc   : > { %1897 = vmatprep.subr.bf16.mxu0 (%p1073_p1), %v2399_v8 }
 0xcdf   : > { %1898 = vmatpush3.bf16.msra.mxu0 (%p1073_p1), %v2156_v47 }
 0xce7   : >> { %v2142_v57 = vpop.eup %2141 }
 0xce8   : >> { %v1157_v58 = vsel %vm644_vm5, %v2142_v57, 0.0  ;;  %v1162_v59 = vpack.c.bf16 %v2142_v57, %v2142_v57  ;;  %v2144_v61 = vpop.eup %2143 }
 0xce9   : >> { %1158 = vadd.xlane.f32.xlu0 %v1157_v58  ;;  %v1156_v62 = vmul.f32 %v2389_v34, %v2144_v61  ;;  %v1161_v2 = vmul.f32 %v2385_v33, %v2144_v61 }
 0xcea   : >> { %1864 = vmatmul.mubr.msk.bf16.vlgmr.msra.gmra.mxu1 %vm644_vm5, %v1162_v59 }
 0xceb   : > { %1871 = vmatprep.mubr.msk.bf16.mxu1 (%p1073_p1), %vm2400_vm1, %v2399_v8  ;;  %1868 = vmatpush3.bf16.msra.mxu1 (%p1073_p1), %v2145_v9 }
 0xcec   : > { %1869 = vmatprep.subr.bf16.mxu1 (%p1073_p1), %v2399_v8 }
 0xcef   : > { %1870 = vmatpush3.bf16.msra.mxu1 (%p1073_p1), %v2146_v10 }
 0xcf0   : > { %1875 = vmatprep.subr.bf16.mxu1 (%p1073_p1), %v2399_v8 }
 0xd72   : >> { %v1159_v63 = vpop.xlane.xlu0 %1158 }
 0xd73   : >> { %v1160_v1 = vadd.f32 %v1159_v63, %v1156_v62  }
 0xd75   : >> { %v2947_v34 = vmov %v1160_v1  ;;  %2157 = vrcp.f32 (%p1073_p1), %v1160_v1 }
 0xd82   : > { %v2158_v21 = vpop.eup (%p1073_p1), %2157 }
 0xdaa   : >> { %v1206_v3 = vpop.f32.mrf.mxu1 }
 0xdab   : >> { %v1212_v4 = vadd.f32 %v1206_v3, %v1161_v2  }
 0xdac   : >> { %v1865_v5 = vpop.f32.mrf.mxu1  ;;  %1076 = sbr.rel (!%p1073_p1) target bundleno = 2823 (0xb07), region = 191 }
 0xdad   : >> { %v2946_v33 = vmov %v1212_v4  ;;  %v1214_v29 = vmul.f32 (%p1073_p1), %v2158_v21, %v1212_v4 }
 0xdae   : >> { %v1209_v6 = vpop.f32.mrf.mxu1  ;;  %v1755_v33 = vld [vmem:[%s2951_s7] ss:$0 sm:$0xff] (%p1073_p1) }
 0xdaf   : > { %1216 = vrot.lane.b32.xlu0 (%p1073_p1), %v1214_v29, %s2420_s0  ;;  %s2421_s0 = smov (%p1073_p1), [#allocation6]  }
 0xdb0   : >> { %v1866_v7 = vpop.f32.mrf.mxu1  ;;  %s2167_s4 = sshll.u32 (%p1073_p1), %s2421_s0, 4  ;;  %s2168_s4 = int_to_ptr.vmem [resolvable:$false] %s2167_s4 }
 0xdb1   : > { %s2169_s22 = scalar_lea.vmem %s2168_s4, 256  ;;  %p2170_p6 = scmp.lt.s32.totalorder %s2820_s1, %s2168_s4 }
 0xdb2   : > { %p2171_p7 = scmp.lt.s32.totalorder %s2169_s22, %s2163_s20 }
 0xdb4   : > { %p2172_p9 = por %p2171_p7, %p2170_p6 }
 0xdb6   : > { %p2173_p10 = pnand %p2172_p9, %p2166_p5 }
 0xe21   : > { %v1217_v39 = vpop.permute.xlu0 %1216 }
 0xe22   : > { %1220 = vst.msk [vmem:[#allocation3] sm:$0xff] %vm1219_vm2, %v1217_v39 }
 0xe29   : > { %v1221_v11 = vld [vmem:[#allocation3] sm:$0xff] }
 0xe2a   : > { %v1222_v12 = vpack.c.bf16 %v1221_v11, %v1221_v11 }
 0xe2c   : > { %1872 = vmatmul.mubr.msk.bf16.vlgmr.msra.gmra.mxu1 %vm505_vm0, %v1222_v12 }
 0xe2d   : > { %1879 = vmatprep.mubr.msk.bf16.mxu1 %vm2400_vm1, %v2399_v8  ;;  %1876 = vmatpush3.bf16.msra.mxu1 %v2147_v27 }
 0xe2e   : > { %1877 = vmatprep.subr.bf16.mxu1 %v2399_v8 }
 0xeec   : > { %v1283_v14 = vpop.f32.mrf.mxu1 }
 0xeed   : > { %v1284_v15 = vadd.f32 %v1751_v13, %v1283_v14 }
 0xeee   : > { %v1873_v16 = vpop.f32.mrf.mxu1 }
 0xeef   : > { %v2759_v17 = vadd.f32 %v1284_v15, %v2560_v0  ;;  %v2148_v0 = vld [vmem:[%s2913_s9] sm:$0xff]  }
 0xef0   : > { %v1286_v18 = vpop.f32.mrf.mxu1  ;;  %1878 = vmatpush3.bf16.msra.mxu1 %v2148_v0 }
 0xef1   : > { %v1292_v19 = vsel %vm505_vm0, %v2759_v17, 0.0 }
 0xef2   : > { %1293 = vadd.xlane.f32.xlu0 %v1292_v19  ;;  %v1874_v20 = vpop.f32.mrf.mxu1 }
 0xf7b   : > { %v1294_v22 = vpop.xlane.xlu0 %1293 }
 0xf7c   : > { %v1295_v23 = vmul.f32 0.03125, %v1294_v22 }
 0xf7e   : > { %v1296_v24 = vsub.f32 %v2759_v17, %v1295_v23 }
 0xf80   : > { %v1297_v25 = vmul.f32 %v1296_v24, %v1296_v24 }
 0xf82   : > { %v1298_v26 = vsel %vm505_vm0, %v1297_v25, 0.0 }
 0xf83   : > { %1299 = vadd.xlane.f32.xlu1 %v1298_v26 }
0x100c   : > { %v1300_v28 = vpop.xlane.xlu1 %1299 }
0x100d   : > { %v1301_v30 = vmul.f32 0.03125, %v1300_v28 }
0x100f   : > { %v1302_v31 = vadd.f32 1e-05, %v1301_v30 }
0x1011   : > { %2159 = vrsqrt.f32 %v1302_v31 }
0x101e   : > { %v2160_v32 = vpop.eup %2159 }
0x101f   : > { %v1304_v34 = vmul.f32 %v2160_v32, %v1296_v24 }
0x1021   : > { %v1311_v36 = vmul.f32 %v1755_v33, %v1304_v34 }
0x1023   : > { %v1318_v37 = vadd.f32 %v1756_v35, %v1311_v36 }
0x1025   : > { %v1319_v38 = vpack.c.bf16 %v1318_v37, %v1318_v37 }
0x1027   : > { %1880 = vmatmul.mubr.msk.bf16.vlgmr.msra.gmra.mxu1 %vm505_vm0, %v1319_v38 }
0x10e7   : > { %v1380_v49 = vpop.f32.mrf.mxu1 }
0x10e8   : > { %v1381_v50 = vadd.f32 %v1757_v48, %v1380_v49 }
0x10e9   : > { %v1881_v51 = vpop.f32.mrf.mxu1 }
0x10ea   : > { %v1387_v52 = vmul.f32 %v1381_v50, %v1381_v50  ;;  %v1386_v59 = vmul.f32 0.5, %v1381_v50 }
0x10eb   : > { %v1383_v53 = vpop.f32.mrf.mxu1 }
0x10ec   : > { %v1388_v54 = vmul.f32 %v1387_v52, %v1381_v50 }
0x10ed   : > { %v1882_v55 = vpop.f32.mrf.mxu1 }
0x10ee   : > { %v1389_v56 = vmul.f32 0.044715, %v1388_v54 }
0x10f0   : > { %v1390_v57 = vadd.f32 %v1389_v56, %v1381_v50 }
0x10f2   : > { %v1391_v58 = vmul.f32 0.7978846, %v1390_v57 }
0x10f4   : > { %2161 = vtanh.f32 %v1391_v58 }
0x1101   : > { %v2162_v8 = vpop.eup %2161 }
0x1102   : > { %v1393_v60 = vadd.f32 1.0, %v2162_v8 }
0x1104   : > { %v1394_v61 = vmul.f32 %v1393_v60, %v1386_v59 }
0x1106   : > { %v1395_v62 = vpack.c.bf16 %v1394_v61, %v1394_v61 }
0x1108   : > { %1900 = vmatmul.mubr.bf16.vlgmr.msra.gmra.mxu0 %v1395_v62 }
0x1109   : > { %2176 = shalt.err (!%p2173_p10)
}
0x110a   : > { %s2177_s2 = scalar_lea.hbm %s2818_s19, 128  ;;  %s2181_s0 = scalar_lea.hbm %s2918_s14, 256 }
0x110b   : > { %p2178_p11 = scmp.ne.s32.totalorder %s2818_s19, %s2177_s2  ;;  %p2182_p0 = scmp.lt.s32.totalorder %s2818_s19, %s2918_s14 }
0x110c   : > { %p2183_p1 = scmp.lt.s32.totalorder %s2181_s0, %s2177_s2 }
0x110d   : > { %p2179_p12 = pnand %p2178_p11, %p2540_p4 }
0x110e   : > { %p2184_p2 = por %p2183_p1, %p2182_p0 }
0x110f   : > { %p2180_p13 = pneg %p2179_p12 }
0x1111   : > { %p2185_p3 = pnand %p2184_p2, %p2180_p13 }
0x1113   : > { %2188 = shalt.err (!%p2185_p3)
}
0x1114   : > { %s2422_s4 = smov 128   ;;  %s2423_s20 = smov 4   ;;  %v1761_v63 = vld [vmem:[%s2916_s12] ss:$0 sm:$0xff] }
0x1115   : > { %s2952_s22 = smov 64   ;;  %s2953_s21 = scalar_lea.sflag [#allocation7], %s2584_s24 }
0x1116   : > { %1904 = dma.vmem_to_hbm [thread:$0]  (%p2540_p4), %s2820_s1, 128, %s2818_s19, %s2953_s21, %s2952_s22, %s2422_s4, %s2423_s20  }
0x1117   : > { %s1772_s2 = sshll.u32 %s2325_s16, 7  ;;  %s1529_s28 = sshll.u32 %s2600_s27, 4  ;;  %s2857_s28 = int_to_ptr.vmem [resolvable:$true] %s1529_s28 }
0x1118   : > { %s2855_s7 = scalar_lea.hbm %s2917_s13, %s1772_s2  ;;  %s1510_s16 = scalar_lea.sflag [#allocation5], %s2584_s24 }
0x1119   : > { %s2189_s1 = scalar_lea.vmem %s2857_s28, 128  ;;  %s2424_s19 = smov [#allocation4]  }
0x111a   : > { %p2190_p5 = scmp.ne.s32.totalorder %s2857_s28, %s2189_s1  ;;  %s2193_s4 = sshll.u32 %s2424_s19, 4  ;;  %s2194_s4 = int_to_ptr.vmem [resolvable:$false] %s2193_s4 }
0x111b   : > { %s2195_s6 = scalar_lea.vmem %s2194_s4, 256  ;;  %p2196_p9 = scmp.lt.s32.totalorder %s2857_s28, %s2194_s4 }
0x111c   : > { %p2191_p6 = pnand %p2190_p5, %p2540_p4  ;;  %p2197_p10 = scmp.lt.s32.totalorder %s2195_s6, %s2189_s1 }
0x111e   : > { %p2192_p7 = pneg %p2191_p6  ;;  %p2198_p11 = por %p2197_p10, %p2196_p9 }
0x1120   : > { %p2199_p12 = pnand %p2198_p11, %p2192_p7 }
0x11c8   : > { %v1501_v1 = vpop.f32.mrf.mxu0 }
0x11c9   : > { %v1502_v2 = vadd.f32 %v1761_v63, %v1501_v1 }
0x11ca   : > { %v1901_v3 = vpop.f32.mrf.mxu0 }
0x11cb   : > { %v1507_v4 = vadd.f32 %v1502_v2, %v2759_v17 }
0x11cc   : > { %v1504_v5 = vpop.f32.mrf.mxu0 }
0x11cd   : > { %1508 = vst.msk [vmem:[%s2600_s27] sm:$0xff] %vm505_vm0, %v1507_v4 }
0x11ce   : > { %v1902_v6 = vpop.f32.mrf.mxu0 }
0x11cf   : > { %2202 = shalt.err (!%p2199_p12)
}
0x11d0   : > { %s2203_s27 = scalar_lea.hbm %s2855_s7, 128  ;;  %s2207_s22 = scalar_lea.hbm %s2917_s13, 256 }
0x11d1   : > { %p2204_p13 = scmp.ne.s32.totalorder %s2855_s7, %s2203_s27  ;;  %p2208_p2 = scmp.lt.s32.totalorder %s2855_s7, %s2917_s13 }
0x11d2   : > { %p2209_p3 = scmp.lt.s32.totalorder %s2207_s22, %s2203_s27 }
0x11d3   : > { %p2205_p0 = pnand %p2204_p13, %p2540_p4 }
0x11d4   : > { %p2210_p5 = por %p2209_p3, %p2208_p2 }
0x11d5   : > { %p2206_p1 = pneg %p2205_p0 }
0x11d7   : > { %p2211_p6 = pnand %p2210_p5, %p2206_p1 }
0x11d9   : > { %2214 = shalt.err (!%p2211_p6)
}
0x11da   : > { %1903 = dma.vmem_to_hbm [thread:$0]  (%p2540_p4), %s2857_s28, 128, %s2855_s7, %s1510_s16  }
0x11db PF: > { %p1914_p7 = scmp.ge.s32.totalorder %s2333_s18, 2  ;;  %s1557_s3 = sand.u32 1, %s2313_s29  }
0x11dc   : > { %s1558_s2 = scalar_lea.sflag [#allocation5], %s1557_s3 }
0x11dd   : > { %p1908_p9 = pnand %p1914_p7, %p2547_p8 }
0x11df   : > { %p1909_p10 = pneg %p1908_p9 }
0x11e1   : > { %2304 = dma.done.wait (%p1909_p10), %s1558_s2, 128  }
0x11e2   : > { %2306 = vsyncadd (%p1909_p10), %s1558_s2, 4294967168  ;;  %s1567_s0 = scalar_lea.sflag [#allocation7], %s1557_s3 }
0x11e3   : > { %2308 = dma.done.wait (%p1909_p10), %s1567_s0, 128  }
0x11e4   : > { %2310 = vsyncadd (%p1909_p10), %s1567_s0, 4294967168  ;;  %s31_s18 = sadd.s32 1, %s2333_s18   ;;  %s2954_s7 = sld [smem:[#allocation10_spill]] }
0x11e5   : > { %p28_p11 = scmp.ge.s32.totalorder %s31_s18, 4   ;;  %s2955_s29 = smov %s2317_s30 }
0x11e6   : > { %s2956_s30 = smov %s2321_s15  ;;  %s2957_s15 = smov %s2553_s26 }
0x11e7   : > { %s2958_s16 = smov %s2329_s17  ;;  %30 = sbr.rel (!%p28_p11) target bundleno = 15 (0xf), region = 202 }
0x11ea   : > { %s2959_s17 = smov %s2954_s7 }
0x11ec   :  { %1572 = vsyncpa [#allocation5], 1 }
0x11ed   :  { %1574 = vsyncpa [#allocation5 + $0x1], 1 }
0x11ee   :  { %1575 = vsyncpa [#allocation7], 1 }
0x11ef   :  { %1577 = vsyncpa [#allocation7 + $0x1], 1 }

</bundles_post_ra>
